<compile_context>
chip_gen: v5e
topology: v5e:2x2
jax: 0.10.0
libtpu: 0.0.40
codegen_flags: <defaults>
</compile_context>

<pallas_src>
import jax
import jax.numpy as jnp
from jax.experimental import pallas as pl
from jax.experimental.pallas import tpu as pltpu

K = 3  # conv kernel size (k_size=3, padding=(k_size-1)//2 = 1)


def _pack_conv_weights(w, width):
    """Pack OIHW conv weights into per-lane rows for the lane-packed conv.

    w: (Co, Ci, K, K).  Returns (Ci*K*K, Co*(width+2) - 2) f32 where row
    r = (c*K + ky)*K + kx holds w[o, c, ky, kx] replicated over the lane
    segment belonging to output channel o (segment stride = width + 2).
    """
    Co, Ci, kh, kw = w.shape
    seg = width + 2
    lanes = Co * seg - 2
    lane_oc = jnp.arange(lanes) // seg                     # output channel per lane
    rows = jnp.transpose(w, (1, 2, 3, 0)).reshape(Ci * kh * kw, Co)
    return rows[:, lane_oc].astype(jnp.float32)


def paconv_kernel(w3p_ref, w4p_ref, x_ref, out_ref):
    """Fused  out = k4( k3(x) * sigmoid(x) )  for one batch element.

    w3p_ref / w4p_ref : (C*K*K, C*(W+2)-2) VMEM lane-packed weights
    x_ref             : (1, C, H, W) VMEM
    out_ref           : (1, H, C*W) VMEM (output channels packed along lanes)
    """
    _, C, H, W = x_ref.shape
    Wp = W + 2                       # per-output-channel lane segment stride
    La = w3p_ref.shape[1]            # = C*Wp - 2 packed lanes in use

    def pad_plane(p):                # (H, W) -> (H+2, W+2), zero halo, in-kernel
        zc = jnp.zeros((H, 1), jnp.float32)
        zr = jnp.zeros((1, Wp), jnp.float32)
        p = jnp.concatenate([zc, p, zc], axis=1)
        return jnp.concatenate([zr, p, zr], axis=0)

    def conv3x3_packed(padded_planes, wp_ref):
        # Returns (H, La) acc where lanes [o*Wp, o*Wp+W) hold output channel o.
        acc = jnp.zeros((H, La), jnp.float32)
        for c in range(C):
            # replicate this input channel once per OUTPUT channel along lanes
            rep = jnp.concatenate([padded_planes[c]] * C, axis=1)    # (H+2, C*Wp)
            for ky in range(K):
                rows = rep[ky:ky + H, :]                             # sublane shift
                for kx in range(K):
                    r = (c * K + ky) * K + kx
                    wrow = wp_ref[r:r + 1, :]                        # (1, La)
                    acc = acc + wrow * rows[:, kx:kx + La]           # lane shift
        return acc

    x_planes = [x_ref[0, c].astype(jnp.float32) for c in range(C)]

    # --- stage 1: k3(x) * sigmoid(x), kept resident in vregs/VMEM -----------
    acc1 = conv3x3_packed([pad_plane(p) for p in x_planes], w3p_ref)
    y_planes = []
    for c in range(C):
        # sigmoid via EUP exp + approximate EUP reciprocal (off the VALU slots)
        gate = pl.reciprocal(1.0 + jnp.exp(-x_planes[c]), approx=True)
        y_planes.append(acc1[:, c * Wp:c * Wp + W] * gate)

    # --- stage 2: k4(y), same fused grid step -------------------------------
    acc2 = conv3x3_packed([pad_plane(p) for p in y_planes], w4p_ref)

    # lane-dense store: one (H, C*W) slab, channels contiguous along lanes
    out = jnp.concatenate([acc2[:, c * Wp:c * Wp + W] for c in range(C)], axis=1)
    out_ref[0] = out.astype(out_ref.dtype)


def paconv_forward(x, w2, b2, w3, w4):
    """PAConv forward.  x: (N, C, H, W).  w3, w4: (C, C, 3, 3) OIHW.

    w2 / b2 (the 1x1 conv) are intentionally unused: the PyTorch forward
    overwrites `y = self.k2(x)` with `y = self.sigmoid(x)`.
    """
    del w2, b2
    N, C, H, W = x.shape
    La = C * (W + 2) - 2

    w3p = _pack_conv_weights(w3, W)          # (C*K*K, La)
    w4p = _pack_conv_weights(w4, W)

    out_packed = pl.pallas_call(
        paconv_kernel,
        out_shape=jax.ShapeDtypeStruct((N, H, C * W), x.dtype),
        grid=(N,),
        in_specs=[
            pl.BlockSpec((C * K * K, La), lambda b: (0, 0)),    # k3 weights (resident)
            pl.BlockSpec((C * K * K, La), lambda b: (0, 0)),    # k4 weights (resident)
            pl.BlockSpec((1, C, H, W), lambda b: (b, 0, 0, 0)),
        ],
        out_specs=pl.BlockSpec((1, H, C * W), lambda b: (b, 0, 0)),
        compiler_params=pltpu.CompilerParams(
            dimension_semantics=("parallel",),   # batch-independent -> megacore on v7x
        ),
    )(w3p, w4p, x)

    # layout plumbing only: (N, H, C*W) -> NCHW
    return out_packed.reshape(N, H, C, W).transpose(0, 2, 1, 3)


# --------------------------------- reference ---------------------------------
def _conv_ref(x, w):
    return jax.lax.conv_general_dilated(
        x, w, window_strides=(1, 1), padding="SAME",
        dimension_numbers=("NCHW", "OIHW", "NCHW"))


def paconv_ref(x, w2, b2, w3, w4):
    del w2, b2                     # unused, matching the PyTorch forward quirk
    y = 1.0 / (1.0 + jnp.exp(-x))
    return _conv_ref(_conv_ref(x, w3) * y, w4)


if __name__ == "__main__":
    nf, N, H, W = 4, 2, 16, 16
    key = jax.random.PRNGKey(0)
    kx, k2w, k2b, k3w, k4w = jax.random.split(key, 5)

    x = jax.random.normal(kx, (N, nf, H, W), dtype=jnp.float32)
    # deterministic synthetic parameters (shapes from PAConv.__init__)
    w2 = jax.random.normal(k2w, (nf, nf, 1, 1), dtype=jnp.float32) * 0.1
    b2 = jax.random.normal(k2b, (nf,), dtype=jnp.float32) * 0.1
    w3 = jax.random.normal(k3w, (nf, nf, K, K), dtype=jnp.float32) * 0.1
    w4 = jax.random.normal(k4w, (nf, nf, K, K), dtype=jnp.float32) * 0.1

    fwd = jax.jit(paconv_forward)
    out = jax.block_until_ready(fwd(x, w2, b2, w3, w4))
    ref = jax.block_until_ready(paconv_ref(x, w2, b2, w3, w4))

    assert out.shape == (N, nf, H, W), out.shape
    # Tolerance covers the EUP approximate reciprocal in the sigmoid gate
    # (~1e-4 relative) propagated through the 3x3 k4 conv.
    err = float(jnp.max(jnp.abs(out - ref)))
    assert jnp.allclose(out, ref, rtol=1e-3, atol=5e-3), err
    print("KERNEL_OK")
</pallas_src>

<mosaic_0001>
module attributes {stable_mosaic.version = 11 : i64} {
  func.func @paconv_kernel(%arg0: i32, %arg1: memref<36x70xf32, #tpu.memory_space<vmem>>, %arg2: memref<36x70xf32, #tpu.memory_space<vmem>>, %arg3: memref<1x4x16x16xf32, #tpu.memory_space<vmem>>, %arg4: memref<1x16x64xf32, #tpu.memory_space<vmem>>) attributes {dimension_semantics = [#tpu.dimension_semantics<parallel>], iteration_bounds = array<i64: 2>, scalar_prefetch = 0 : i64, scratch_operands = 0 : i64, tpu.core_type = #tpu.core_type<tc>, window_params = [{pipeline_mode = #tpu.pipeline_mode<synchronous>, transform_indices = @transform_0, window_bounds = array<i64: 36, 70>}, {pipeline_mode = #tpu.pipeline_mode<synchronous>, transform_indices = @transform_1, window_bounds = array<i64: 36, 70>}, {transform_indices = @transform_2, window_bounds = array<i64: 1, 4, 16, 16>}, {transform_indices = @transform_3, window_bounds = array<i64: 1, 16, 64>}]} {
    %c0 = arith.constant 0 : index
    %c0_0 = arith.constant 0 : index
    %c0_1 = arith.constant 0 : index
    %c0_2 = arith.constant 0 : index
    %0 = vector.load %arg3[%c0, %c0_0, %c0_1, %c0_2] : memref<1x4x16x16xf32, #tpu.memory_space<vmem>>, vector<1x1x16x16xf32>
    %1 = vector.shape_cast %0 : vector<1x1x16x16xf32> to vector<16x16xf32>
    %c0_3 = arith.constant 0 : index
    %c1 = arith.constant 1 : index
    %c0_4 = arith.constant 0 : index
    %c0_5 = arith.constant 0 : index
    %2 = vector.load %arg3[%c0_3, %c1, %c0_4, %c0_5] : memref<1x4x16x16xf32, #tpu.memory_space<vmem>>, vector<1x1x16x16xf32>
    %3 = vector.shape_cast %2 : vector<1x1x16x16xf32> to vector<16x16xf32>
    %c0_6 = arith.constant 0 : index
    %c2 = arith.constant 2 : index
    %c0_7 = arith.constant 0 : index
    %c0_8 = arith.constant 0 : index
    %4 = vector.load %arg3[%c0_6, %c2, %c0_7, %c0_8] : memref<1x4x16x16xf32, #tpu.memory_space<vmem>>, vector<1x1x16x16xf32>
    %5 = vector.shape_cast %4 : vector<1x1x16x16xf32> to vector<16x16xf32>
    %c0_9 = arith.constant 0 : index
    %c3 = arith.constant 3 : index
    %c0_10 = arith.constant 0 : index
    %c0_11 = arith.constant 0 : index
    %6 = vector.load %arg3[%c0_9, %c3, %c0_10, %c0_11] : memref<1x4x16x16xf32, #tpu.memory_space<vmem>>, vector<1x1x16x16xf32>
    %7 = vector.shape_cast %6 : vector<1x1x16x16xf32> to vector<16x16xf32>
    %cst = arith.constant 0.000000e+00 : f32
    %8 = vector.broadcast %cst : f32 to vector<16x1xf32>
    %cst_12 = arith.constant 0.000000e+00 : f32
    %9 = vector.broadcast %cst_12 : f32 to vector<1x18xf32>
    %10 = tpu.concatenate %8, %1, %8 in 1 : vector<16x1xf32>, vector<16x16xf32>, vector<16x1xf32> -> vector<16x18xf32>
    %11 = tpu.concatenate %9, %10, %9 in 0 : vector<1x18xf32>, vector<16x18xf32>, vector<1x18xf32> -> vector<18x18xf32>
    %cst_13 = arith.constant 0.000000e+00 : f32
    %12 = vector.broadcast %cst_13 : f32 to vector<16x1xf32>
    %cst_14 = arith.constant 0.000000e+00 : f32
    %13 = vector.broadcast %cst_14 : f32 to vector<1x18xf32>
    %14 = tpu.concatenate %12, %3, %12 in 1 : vector<16x1xf32>, vector<16x16xf32>, vector<16x1xf32> -> vector<16x18xf32>
    %15 = tpu.concatenate %13, %14, %13 in 0 : vector<1x18xf32>, vector<16x18xf32>, vector<1x18xf32> -> vector<18x18xf32>
    %cst_15 = arith.constant 0.000000e+00 : f32
    %16 = vector.broadcast %cst_15 : f32 to vector<16x1xf32>
    %cst_16 = arith.constant 0.000000e+00 : f32
    %17 = vector.broadcast %cst_16 : f32 to vector<1x18xf32>
    %18 = tpu.concatenate %16, %5, %16 in 1 : vector<16x1xf32>, vector<16x16xf32>, vector<16x1xf32> -> vector<16x18xf32>
    %19 = tpu.concatenate %17, %18, %17 in 0 : vector<1x18xf32>, vector<16x18xf32>, vector<1x18xf32> -> vector<18x18xf32>
    %cst_17 = arith.constant 0.000000e+00 : f32
    %20 = vector.broadcast %cst_17 : f32 to vector<16x1xf32>
    %cst_18 = arith.constant 0.000000e+00 : f32
    %21 = vector.broadcast %cst_18 : f32 to vector<1x18xf32>
    %22 = tpu.concatenate %20, %7, %20 in 1 : vector<16x1xf32>, vector<16x16xf32>, vector<16x1xf32> -> vector<16x18xf32>
    %23 = tpu.concatenate %21, %22, %21 in 0 : vector<1x18xf32>, vector<16x18xf32>, vector<1x18xf32> -> vector<18x18xf32>
    %cst_19 = arith.constant 0.000000e+00 : f32
    %24 = vector.broadcast %cst_19 : f32 to vector<16x70xf32>
    %25 = tpu.concatenate %11, %11, %11, %11 in 1 : vector<18x18xf32>, vector<18x18xf32>, vector<18x18xf32>, vector<18x18xf32> -> vector<18x72xf32>
    %26 = vector.extract_strided_slice %25 {offsets = [0, 0], sizes = [16, 72], strides = [1, 1]} : vector<18x72xf32> to vector<16x72xf32>
    %c0_20 = arith.constant 0 : index
    %c0_21 = arith.constant 0 : index
    %27 = vector.load %arg1[%c0_20, %c0_21] : memref<36x70xf32, #tpu.memory_space<vmem>>, vector<1x70xf32>
    %28 = vector.extract_strided_slice %26 {offsets = [0, 0], sizes = [16, 70], strides = [1, 1]} : vector<16x72xf32> to vector<16x70xf32>
    %29 = vector.broadcast %27 : vector<1x70xf32> to vector<16x70xf32>
    %30 = arith.mulf %29, %28 : vector<16x70xf32>
    %31 = arith.addf %24, %30 : vector<16x70xf32>
    %c1_22 = arith.constant 1 : index
    %c0_23 = arith.constant 0 : index
    %32 = vector.load %arg1[%c1_22, %c0_23] : memref<36x70xf32, #tpu.memory_space<vmem>>, vector<1x70xf32>
    %33 = vector.extract_strided_slice %26 {offsets = [0, 1], sizes = [16, 70], strides = [1, 1]} : vector<16x72xf32> to vector<16x70xf32>
    %34 = vector.broadcast %32 : vector<1x70xf32> to vector<16x70xf32>
    %35 = arith.mulf %34, %33 : vector<16x70xf32>
    %36 = arith.addf %31, %35 : vector<16x70xf32>
    %c2_24 = arith.constant 2 : index
    %c0_25 = arith.constant 0 : index
    %37 = vector.load %arg1[%c2_24, %c0_25] : memref<36x70xf32, #tpu.memory_space<vmem>>, vector<1x70xf32>
    %38 = vector.extract_strided_slice %26 {offsets = [0, 2], sizes = [16, 70], strides = [1, 1]} : vector<16x72xf32> to vector<16x70xf32>
    %39 = vector.broadcast %37 : vector<1x70xf32> to vector<16x70xf32>
    %40 = arith.mulf %39, %38 : vector<16x70xf32>
    %41 = arith.addf %36, %40 : vector<16x70xf32>
    %42 = vector.extract_strided_slice %25 {offsets = [1, 0], sizes = [16, 72], strides = [1, 1]} : vector<18x72xf32> to vector<16x72xf32>
    %c3_26 = arith.constant 3 : index
    %c0_27 = arith.constant 0 : index
    %43 = vector.load %arg1[%c3_26, %c0_27] : memref<36x70xf32, #tpu.memory_space<vmem>>, vector<1x70xf32>
    %44 = vector.extract_strided_slice %42 {offsets = [0, 0], sizes = [16, 70], strides = [1, 1]} : vector<16x72xf32> to vector<16x70xf32>
    %45 = vector.broadcast %43 : vector<1x70xf32> to vector<16x70xf32>
    %46 = arith.mulf %45, %44 : vector<16x70xf32>
    %47 = arith.addf %41, %46 : vector<16x70xf32>
    %c4 = arith.constant 4 : index
    %c0_28 = arith.constant 0 : index
    %48 = vector.load %arg1[%c4, %c0_28] : memref<36x70xf32, #tpu.memory_space<vmem>>, vector<1x70xf32>
    %49 = vector.extract_strided_slice %42 {offsets = [0, 1], sizes = [16, 70], strides = [1, 1]} : vector<16x72xf32> to vector<16x70xf32>
    %50 = vector.broadcast %48 : vector<1x70xf32> to vector<16x70xf32>
    %51 = arith.mulf %50, %49 : vector<16x70xf32>
    %52 = arith.addf %47, %51 : vector<16x70xf32>
    %c5 = arith.constant 5 : index
    %c0_29 = arith.constant 0 : index
    %53 = vector.load %arg1[%c5, %c0_29] : memref<36x70xf32, #tpu.memory_space<vmem>>, vector<1x70xf32>
    %54 = vector.extract_strided_slice %42 {offsets = [0, 2], sizes = [16, 70], strides = [1, 1]} : vector<16x72xf32> to vector<16x70xf32>
    %55 = vector.broadcast %53 : vector<1x70xf32> to vector<16x70xf32>
    %56 = arith.mulf %55, %54 : vector<16x70xf32>
    %57 = arith.addf %52, %56 : vector<16x70xf32>
    %58 = vector.extract_strided_slice %25 {offsets = [2, 0], sizes = [16, 72], strides = [1, 1]} : vector<18x72xf32> to vector<16x72xf32>
    %c6 = arith.constant 6 : index
    %c0_30 = arith.constant 0 : index
    %59 = vector.load %arg1[%c6, %c0_30] : memref<36x70xf32, #tpu.memory_space<vmem>>, vector<1x70xf32>
    %60 = vector.extract_strided_slice %58 {offsets = [0, 0], sizes = [16, 70], strides = [1, 1]} : vector<16x72xf32> to vector<16x70xf32>
    %61 = vector.broadcast %59 : vector<1x70xf32> to vector<16x70xf32>
    %62 = arith.mulf %61, %60 : vector<16x70xf32>
    %63 = arith.addf %57, %62 : vector<16x70xf32>
    %c7 = arith.constant 7 : index
    %c0_31 = arith.constant 0 : index
    %64 = vector.load %arg1[%c7, %c0_31] : memref<36x70xf32, #tpu.memory_space<vmem>>, vector<1x70xf32>
    %65 = vector.extract_strided_slice %58 {offsets = [0, 1], sizes = [16, 70], strides = [1, 1]} : vector<16x72xf32> to vector<16x70xf32>
    %66 = vector.broadcast %64 : vector<1x70xf32> to vector<16x70xf32>
    %67 = arith.mulf %66, %65 : vector<16x70xf32>
    %68 = arith.addf %63, %67 : vector<16x70xf32>
    %c8 = arith.constant 8 : index
    %c0_32 = arith.constant 0 : index
    %69 = vector.load %arg1[%c8, %c0_32] : memref<36x70xf32, #tpu.memory_space<vmem>>, vector<1x70xf32>
    %70 = vector.extract_strided_slice %58 {offsets = [0, 2], sizes = [16, 70], strides = [1, 1]} : vector<16x72xf32> to vector<16x70xf32>
    %71 = vector.broadcast %69 : vector<1x70xf32> to vector<16x70xf32>
    %72 = arith.mulf %71, %70 : vector<16x70xf32>
    %73 = arith.addf %68, %72 : vector<16x70xf32>
    %74 = tpu.concatenate %15, %15, %15, %15 in 1 : vector<18x18xf32>, vector<18x18xf32>, vector<18x18xf32>, vector<18x18xf32> -> vector<18x72xf32>
    %75 = vector.extract_strided_slice %74 {offsets = [0, 0], sizes = [16, 72], strides = [1, 1]} : vector<18x72xf32> to vector<16x72xf32>
    %c9 = arith.constant 9 : index
    %c0_33 = arith.constant 0 : index
    %76 = vector.load %arg1[%c9, %c0_33] : memref<36x70xf32, #tpu.memory_space<vmem>>, vector<1x70xf32>
    %77 = vector.extract_strided_slice %75 {offsets = [0, 0], sizes = [16, 70], strides = [1, 1]} : vector<16x72xf32> to vector<16x70xf32>
    %78 = vector.broadcast %76 : vector<1x70xf32> to vector<16x70xf32>
    %79 = arith.mulf %78, %77 : vector<16x70xf32>
    %80 = arith.addf %73, %79 : vector<16x70xf32>
    %c10 = arith.constant 10 : index
    %c0_34 = arith.constant 0 : index
    %81 = vector.load %arg1[%c10, %c0_34] : memref<36x70xf32, #tpu.memory_space<vmem>>, vector<1x70xf32>
    %82 = vector.extract_strided_slice %75 {offsets = [0, 1], sizes = [16, 70], strides = [1, 1]} : vector<16x72xf32> to vector<16x70xf32>
    %83 = vector.broadcast %81 : vector<1x70xf32> to vector<16x70xf32>
    %84 = arith.mulf %83, %82 : vector<16x70xf32>
    %85 = arith.addf %80, %84 : vector<16x70xf32>
    %c11 = arith.constant 11 : index
    %c0_35 = arith.constant 0 : index
    %86 = vector.load %arg1[%c11, %c0_35] : memref<36x70xf32, #tpu.memory_space<vmem>>, vector<1x70xf32>
    %87 = vector.extract_strided_slice %75 {offsets = [0, 2], sizes = [16, 70], strides = [1, 1]} : vector<16x72xf32> to vector<16x70xf32>
    %88 = vector.broadcast %86 : vector<1x70xf32> to vector<16x70xf32>
    %89 = arith.mulf %88, %87 : vector<16x70xf32>
    %90 = arith.addf %85, %89 : vector<16x70xf32>
    %91 = vector.extract_strided_slice %74 {offsets = [1, 0], sizes = [16, 72], strides = [1, 1]} : vector<18x72xf32> to vector<16x72xf32>
    %c12 = arith.constant 12 : index
    %c0_36 = arith.constant 0 : index
    %92 = vector.load %arg1[%c12, %c0_36] : memref<36x70xf32, #tpu.memory_space<vmem>>, vector<1x70xf32>
    %93 = vector.extract_strided_slice %91 {offsets = [0, 0], sizes = [16, 70], strides = [1, 1]} : vector<16x72xf32> to vector<16x70xf32>
    %94 = vector.broadcast %92 : vector<1x70xf32> to vector<16x70xf32>
    %95 = arith.mulf %94, %93 : vector<16x70xf32>
    %96 = arith.addf %90, %95 : vector<16x70xf32>
    %c13 = arith.constant 13 : index
    %c0_37 = arith.constant 0 : index
    %97 = vector.load %arg1[%c13, %c0_37] : memref<36x70xf32, #tpu.memory_space<vmem>>, vector<1x70xf32>
    %98 = vector.extract_strided_slice %91 {offsets = [0, 1], sizes = [16, 70], strides = [1, 1]} : vector<16x72xf32> to vector<16x70xf32>
    %99 = vector.broadcast %97 : vector<1x70xf32> to vector<16x70xf32>
    %100 = arith.mulf %99, %98 : vector<16x70xf32>
    %101 = arith.addf %96, %100 : vector<16x70xf32>
    %c14 = arith.constant 14 : index
    %c0_38 = arith.constant 0 : index
    %102 = vector.load %arg1[%c14, %c0_38] : memref<36x70xf32, #tpu.memory_space<vmem>>, vector<1x70xf32>
    %103 = vector.extract_strided_slice %91 {offsets = [0, 2], sizes = [16, 70], strides = [1, 1]} : vector<16x72xf32> to vector<16x70xf32>
    %104 = vector.broadcast %102 : vector<1x70xf32> to vector<16x70xf32>
    %105 = arith.mulf %104, %103 : vector<16x70xf32>
    %106 = arith.addf %101, %105 : vector<16x70xf32>
    %107 = vector.extract_strided_slice %74 {offsets = [2, 0], sizes = [16, 72], strides = [1, 1]} : vector<18x72xf32> to vector<16x72xf32>
    %c15 = arith.constant 15 : index
    %c0_39 = arith.constant 0 : index
    %108 = vector.load %arg1[%c15, %c0_39] : memref<36x70xf32, #tpu.memory_space<vmem>>, vector<1x70xf32>
    %109 = vector.extract_strided_slice %107 {offsets = [0, 0], sizes = [16, 70], strides = [1, 1]} : vector<16x72xf32> to vector<16x70xf32>
    %110 = vector.broadcast %108 : vector<1x70xf32> to vector<16x70xf32>
    %111 = arith.mulf %110, %109 : vector<16x70xf32>
    %112 = arith.addf %106, %111 : vector<16x70xf32>
    %c16 = arith.constant 16 : index
    %c0_40 = arith.constant 0 : index
    %113 = vector.load %arg1[%c16, %c0_40] : memref<36x70xf32, #tpu.memory_space<vmem>>, vector<1x70xf32>
    %114 = vector.extract_strided_slice %107 {offsets = [0, 1], sizes = [16, 70], strides = [1, 1]} : vector<16x72xf32> to vector<16x70xf32>
    %115 = vector.broadcast %113 : vector<1x70xf32> to vector<16x70xf32>
    %116 = arith.mulf %115, %114 : vector<16x70xf32>
    %117 = arith.addf %112, %116 : vector<16x70xf32>
    %c17 = arith.constant 17 : index
    %c0_41 = arith.constant 0 : index
    %118 = vector.load %arg1[%c17, %c0_41] : memref<36x70xf32, #tpu.memory_space<vmem>>, vector<1x70xf32>
    %119 = vector.extract_strided_slice %107 {offsets = [0, 2], sizes = [16, 70], strides = [1, 1]} : vector<16x72xf32> to vector<16x70xf32>
    %120 = vector.broadcast %118 : vector<1x70xf32> to vector<16x70xf32>
    %121 = arith.mulf %120, %119 : vector<16x70xf32>
    %122 = arith.addf %117, %121 : vector<16x70xf32>
    %123 = tpu.concatenate %19, %19, %19, %19 in 1 : vector<18x18xf32>, vector<18x18xf32>, vector<18x18xf32>, vector<18x18xf32> -> vector<18x72xf32>
    %124 = vector.extract_strided_slice %123 {offsets = [0, 0], sizes = [16, 72], strides = [1, 1]} : vector<18x72xf32> to vector<16x72xf32>
    %c18 = arith.constant 18 : index
    %c0_42 = arith.constant 0 : index
    %125 = vector.load %arg1[%c18, %c0_42] : memref<36x70xf32, #tpu.memory_space<vmem>>, vector<1x70xf32>
    %126 = vector.extract_strided_slice %124 {offsets = [0, 0], sizes = [16, 70], strides = [1, 1]} : vector<16x72xf32> to vector<16x70xf32>
    %127 = vector.broadcast %125 : vector<1x70xf32> to vector<16x70xf32>
    %128 = arith.mulf %127, %126 : vector<16x70xf32>
    %129 = arith.addf %122, %128 : vector<16x70xf32>
    %c19 = arith.constant 19 : index
    %c0_43 = arith.constant 0 : index
    %130 = vector.load %arg1[%c19, %c0_43] : memref<36x70xf32, #tpu.memory_space<vmem>>, vector<1x70xf32>
    %131 = vector.extract_strided_slice %124 {offsets = [0, 1], sizes = [16, 70], strides = [1, 1]} : vector<16x72xf32> to vector<16x70xf32>
    %132 = vector.broadcast %130 : vector<1x70xf32> to vector<16x70xf32>
    %133 = arith.mulf %132, %131 : vector<16x70xf32>
    %134 = arith.addf %129, %133 : vector<16x70xf32>
    %c20 = arith.constant 20 : index
    %c0_44 = arith.constant 0 : index
    %135 = vector.load %arg1[%c20, %c0_44] : memref<36x70xf32, #tpu.memory_space<vmem>>, vector<1x70xf32>
    %136 = vector.extract_strided_slice %124 {offsets = [0, 2], sizes = [16, 70], strides = [1, 1]} : vector<16x72xf32> to vector<16x70xf32>
    %137 = vector.broadcast %135 : vector<1x70xf32> to vector<16x70xf32>
    %138 = arith.mulf %137, %136 : vector<16x70xf32>
    %139 = arith.addf %134, %138 : vector<16x70xf32>
    %140 = vector.extract_strided_slice %123 {offsets = [1, 0], sizes = [16, 72], strides = [1, 1]} : vector<18x72xf32> to vector<16x72xf32>
    %c21 = arith.constant 21 : index
    %c0_45 = arith.constant 0 : index
    %141 = vector.load %arg1[%c21, %c0_45] : memref<36x70xf32, #tpu.memory_space<vmem>>, vector<1x70xf32>
    %142 = vector.extract_strided_slice %140 {offsets = [0, 0], sizes = [16, 70], strides = [1, 1]} : vector<16x72xf32> to vector<16x70xf32>
    %143 = vector.broadcast %141 : vector<1x70xf32> to vector<16x70xf32>
    %144 = arith.mulf %143, %142 : vector<16x70xf32>
    %145 = arith.addf %139, %144 : vector<16x70xf32>
    %c22 = arith.constant 22 : index
    %c0_46 = arith.constant 0 : index
    %146 = vector.load %arg1[%c22, %c0_46] : memref<36x70xf32, #tpu.memory_space<vmem>>, vector<1x70xf32>
    %147 = vector.extract_strided_slice %140 {offsets = [0, 1], sizes = [16, 70], strides = [1, 1]} : vector<16x72xf32> to vector<16x70xf32>
    %148 = vector.broadcast %146 : vector<1x70xf32> to vector<16x70xf32>
    %149 = arith.mulf %148, %147 : vector<16x70xf32>
    %150 = arith.addf %145, %149 : vector<16x70xf32>
    %c23 = arith.constant 23 : index
    %c0_47 = arith.constant 0 : index
    %151 = vector.load %arg1[%c23, %c0_47] : memref<36x70xf32, #tpu.memory_space<vmem>>, vector<1x70xf32>
    %152 = vector.extract_strided_slice %140 {offsets = [0, 2], sizes = [16, 70], strides = [1, 1]} : vector<16x72xf32> to vector<16x70xf32>
    %153 = vector.broadcast %151 : vector<1x70xf32> to vector<16x70xf32>
    %154 = arith.mulf %153, %152 : vector<16x70xf32>
    %155 = arith.addf %150, %154 : vector<16x70xf32>
    %156 = vector.extract_strided_slice %123 {offsets = [2, 0], sizes = [16, 72], strides = [1, 1]} : vector<18x72xf32> to vector<16x72xf32>
    %c24 = arith.constant 24 : index
    %c0_48 = arith.constant 0 : index
    %157 = vector.load %arg1[%c24, %c0_48] : memref<36x70xf32, #tpu.memory_space<vmem>>, vector<1x70xf32>
    %158 = vector.extract_strided_slice %156 {offsets = [0, 0], sizes = [16, 70], strides = [1, 1]} : vector<16x72xf32> to vector<16x70xf32>
    %159 = vector.broadcast %157 : vector<1x70xf32> to vector<16x70xf32>
    %160 = arith.mulf %159, %158 : vector<16x70xf32>
    %161 = arith.addf %155, %160 : vector<16x70xf32>
    %c25 = arith.constant 25 : index
    %c0_49 = arith.constant 0 : index
    %162 = vector.load %arg1[%c25, %c0_49] : memref<36x70xf32, #tpu.memory_space<vmem>>, vector<1x70xf32>
    %163 = vector.extract_strided_slice %156 {offsets = [0, 1], sizes = [16, 70], strides = [1, 1]} : vector<16x72xf32> to vector<16x70xf32>
    %164 = vector.broadcast %162 : vector<1x70xf32> to vector<16x70xf32>
    %165 = arith.mulf %164, %163 : vector<16x70xf32>
    %166 = arith.addf %161, %165 : vector<16x70xf32>
    %c26 = arith.constant 26 : index
    %c0_50 = arith.constant 0 : index
    %167 = vector.load %arg1[%c26, %c0_50] : memref<36x70xf32, #tpu.memory_space<vmem>>, vector<1x70xf32>
    %168 = vector.extract_strided_slice %156 {offsets = [0, 2], sizes = [16, 70], strides = [1, 1]} : vector<16x72xf32> to vector<16x70xf32>
    %169 = vector.broadcast %167 : vector<1x70xf32> to vector<16x70xf32>
    %170 = arith.mulf %169, %168 : vector<16x70xf32>
    %171 = arith.addf %166, %170 : vector<16x70xf32>
    %172 = tpu.concatenate %23, %23, %23, %23 in 1 : vector<18x18xf32>, vector<18x18xf32>, vector<18x18xf32>, vector<18x18xf32> -> vector<18x72xf32>
    %173 = vector.extract_strided_slice %172 {offsets = [0, 0], sizes = [16, 72], strides = [1, 1]} : vector<18x72xf32> to vector<16x72xf32>
    %c27 = arith.constant 27 : index
    %c0_51 = arith.constant 0 : index
    %174 = vector.load %arg1[%c27, %c0_51] : memref<36x70xf32, #tpu.memory_space<vmem>>, vector<1x70xf32>
    %175 = vector.extract_strided_slice %173 {offsets = [0, 0], sizes = [16, 70], strides = [1, 1]} : vector<16x72xf32> to vector<16x70xf32>
    %176 = vector.broadcast %174 : vector<1x70xf32> to vector<16x70xf32>
    %177 = arith.mulf %176, %175 : vector<16x70xf32>
    %178 = arith.addf %171, %177 : vector<16x70xf32>
    %c28 = arith.constant 28 : index
    %c0_52 = arith.constant 0 : index
    %179 = vector.load %arg1[%c28, %c0_52] : memref<36x70xf32, #tpu.memory_space<vmem>>, vector<1x70xf32>
    %180 = vector.extract_strided_slice %173 {offsets = [0, 1], sizes = [16, 70], strides = [1, 1]} : vector<16x72xf32> to vector<16x70xf32>
    %181 = vector.broadcast %179 : vector<1x70xf32> to vector<16x70xf32>
    %182 = arith.mulf %181, %180 : vector<16x70xf32>
    %183 = arith.addf %178, %182 : vector<16x70xf32>
    %c29 = arith.constant 29 : index
    %c0_53 = arith.constant 0 : index
    %184 = vector.load %arg1[%c29, %c0_53] : memref<36x70xf32, #tpu.memory_space<vmem>>, vector<1x70xf32>
    %185 = vector.extract_strided_slice %173 {offsets = [0, 2], sizes = [16, 70], strides = [1, 1]} : vector<16x72xf32> to vector<16x70xf32>
    %186 = vector.broadcast %184 : vector<1x70xf32> to vector<16x70xf32>
    %187 = arith.mulf %186, %185 : vector<16x70xf32>
    %188 = arith.addf %183, %187 : vector<16x70xf32>
    %189 = vector.extract_strided_slice %172 {offsets = [1, 0], sizes = [16, 72], strides = [1, 1]} : vector<18x72xf32> to vector<16x72xf32>
    %c30 = arith.constant 30 : index
    %c0_54 = arith.constant 0 : index
    %190 = vector.load %arg1[%c30, %c0_54] : memref<36x70xf32, #tpu.memory_space<vmem>>, vector<1x70xf32>
    %191 = vector.extract_strided_slice %189 {offsets = [0, 0], sizes = [16, 70], strides = [1, 1]} : vector<16x72xf32> to vector<16x70xf32>
    %192 = vector.broadcast %190 : vector<1x70xf32> to vector<16x70xf32>
    %193 = arith.mulf %192, %191 : vector<16x70xf32>
    %194 = arith.addf %188, %193 : vector<16x70xf32>
    %c31 = arith.constant 31 : index
    %c0_55 = arith.constant 0 : index
    %195 = vector.load %arg1[%c31, %c0_55] : memref<36x70xf32, #tpu.memory_space<vmem>>, vector<1x70xf32>
    %196 = vector.extract_strided_slice %189 {offsets = [0, 1], sizes = [16, 70], strides = [1, 1]} : vector<16x72xf32> to vector<16x70xf32>
    %197 = vector.broadcast %195 : vector<1x70xf32> to vector<16x70xf32>
    %198 = arith.mulf %197, %196 : vector<16x70xf32>
    %199 = arith.addf %194, %198 : vector<16x70xf32>
    %c32 = arith.constant 32 : index
    %c0_56 = arith.constant 0 : index
    %200 = vector.load %arg1[%c32, %c0_56] : memref<36x70xf32, #tpu.memory_space<vmem>>, vector<1x70xf32>
    %201 = vector.extract_strided_slice %189 {offsets = [0, 2], sizes = [16, 70], strides = [1, 1]} : vector<16x72xf32> to vector<16x70xf32>
    %202 = vector.broadcast %200 : vector<1x70xf32> to vector<16x70xf32>
    %203 = arith.mulf %202, %201 : vector<16x70xf32>
    %204 = arith.addf %199, %203 : vector<16x70xf32>
    %205 = vector.extract_strided_slice %172 {offsets = [2, 0], sizes = [16, 72], strides = [1, 1]} : vector<18x72xf32> to vector<16x72xf32>
    %c33 = arith.constant 33 : index
    %c0_57 = arith.constant 0 : index
    %206 = vector.load %arg1[%c33, %c0_57] : memref<36x70xf32, #tpu.memory_space<vmem>>, vector<1x70xf32>
    %207 = vector.extract_strided_slice %205 {offsets = [0, 0], sizes = [16, 70], strides = [1, 1]} : vector<16x72xf32> to vector<16x70xf32>
    %208 = vector.broadcast %206 : vector<1x70xf32> to vector<16x70xf32>
    %209 = arith.mulf %208, %207 : vector<16x70xf32>
    %210 = arith.addf %204, %209 : vector<16x70xf32>
    %c34 = arith.constant 34 : index
    %c0_58 = arith.constant 0 : index
    %211 = vector.load %arg1[%c34, %c0_58] : memref<36x70xf32, #tpu.memory_space<vmem>>, vector<1x70xf32>
    %212 = vector.extract_strided_slice %205 {offsets = [0, 1], sizes = [16, 70], strides = [1, 1]} : vector<16x72xf32> to vector<16x70xf32>
    %213 = vector.broadcast %211 : vector<1x70xf32> to vector<16x70xf32>
    %214 = arith.mulf %213, %212 : vector<16x70xf32>
    %215 = arith.addf %210, %214 : vector<16x70xf32>
    %c35 = arith.constant 35 : index
    %c0_59 = arith.constant 0 : index
    %216 = vector.load %arg1[%c35, %c0_59] : memref<36x70xf32, #tpu.memory_space<vmem>>, vector<1x70xf32>
    %217 = vector.extract_strided_slice %205 {offsets = [0, 2], sizes = [16, 70], strides = [1, 1]} : vector<16x72xf32> to vector<16x70xf32>
    %218 = vector.broadcast %216 : vector<1x70xf32> to vector<16x70xf32>
    %219 = arith.mulf %218, %217 : vector<16x70xf32>
    %220 = arith.addf %215, %219 : vector<16x70xf32>
    %cst_60 = arith.constant 0.000000e+00 : f32
    %221 = vector.broadcast %cst_60 : f32 to vector<16x16xf32>
    %222 = arith.subf %221, %1 : vector<16x16xf32>
    %223 = math.exp %222 : vector<16x16xf32>
    %cst_61 = arith.constant 1.000000e+00 : f32
    %224 = vector.broadcast %cst_61 : f32 to vector<16x16xf32>
    %225 = arith.addf %224, %223 : vector<16x16xf32>
    %226 = tpu.reciprocal %225 {approx = true} : vector<16x16xf32> -> vector<16x16xf32>
    %227 = vector.extract_strided_slice %220 {offsets = [0, 0], sizes = [16, 16], strides = [1, 1]} : vector<16x70xf32> to vector<16x16xf32>
    %228 = arith.mulf %227, %226 : vector<16x16xf32>
    %cst_62 = arith.constant 0.000000e+00 : f32
    %229 = vector.broadcast %cst_62 : f32 to vector<16x16xf32>
    %230 = arith.subf %229, %3 : vector<16x16xf32>
    %231 = math.exp %230 : vector<16x16xf32>
    %cst_63 = arith.constant 1.000000e+00 : f32
    %232 = vector.broadcast %cst_63 : f32 to vector<16x16xf32>
    %233 = arith.addf %232, %231 : vector<16x16xf32>
    %234 = tpu.reciprocal %233 {approx = true} : vector<16x16xf32> -> vector<16x16xf32>
    %235 = vector.extract_strided_slice %220 {offsets = [0, 18], sizes = [16, 16], strides = [1, 1]} : vector<16x70xf32> to vector<16x16xf32>
    %236 = arith.mulf %235, %234 : vector<16x16xf32>
    %cst_64 = arith.constant 0.000000e+00 : f32
    %237 = vector.broadcast %cst_64 : f32 to vector<16x16xf32>
    %238 = arith.subf %237, %5 : vector<16x16xf32>
    %239 = math.exp %238 : vector<16x16xf32>
    %cst_65 = arith.constant 1.000000e+00 : f32
    %240 = vector.broadcast %cst_65 : f32 to vector<16x16xf32>
    %241 = arith.addf %240, %239 : vector<16x16xf32>
    %242 = tpu.reciprocal %241 {approx = true} : vector<16x16xf32> -> vector<16x16xf32>
    %243 = vector.extract_strided_slice %220 {offsets = [0, 36], sizes = [16, 16], strides = [1, 1]} : vector<16x70xf32> to vector<16x16xf32>
    %244 = arith.mulf %243, %242 : vector<16x16xf32>
    %cst_66 = arith.constant 0.000000e+00 : f32
    %245 = vector.broadcast %cst_66 : f32 to vector<16x16xf32>
    %246 = arith.subf %245, %7 : vector<16x16xf32>
    %247 = math.exp %246 : vector<16x16xf32>
    %cst_67 = arith.constant 1.000000e+00 : f32
    %248 = vector.broadcast %cst_67 : f32 to vector<16x16xf32>
    %249 = arith.addf %248, %247 : vector<16x16xf32>
    %250 = tpu.reciprocal %249 {approx = true} : vector<16x16xf32> -> vector<16x16xf32>
    %251 = vector.extract_strided_slice %220 {offsets = [0, 54], sizes = [16, 16], strides = [1, 1]} : vector<16x70xf32> to vector<16x16xf32>
    %252 = arith.mulf %251, %250 : vector<16x16xf32>
    %cst_68 = arith.constant 0.000000e+00 : f32
    %253 = vector.broadcast %cst_68 : f32 to vector<16x1xf32>
    %cst_69 = arith.constant 0.000000e+00 : f32
    %254 = vector.broadcast %cst_69 : f32 to vector<1x18xf32>
    %255 = tpu.concatenate %253, %228, %253 in 1 : vector<16x1xf32>, vector<16x16xf32>, vector<16x1xf32> -> vector<16x18xf32>
    %256 = tpu.concatenate %254, %255, %254 in 0 : vector<1x18xf32>, vector<16x18xf32>, vector<1x18xf32> -> vector<18x18xf32>
    %cst_70 = arith.constant 0.000000e+00 : f32
    %257 = vector.broadcast %cst_70 : f32 to vector<16x1xf32>
    %cst_71 = arith.constant 0.000000e+00 : f32
    %258 = vector.broadcast %cst_71 : f32 to vector<1x18xf32>
    %259 = tpu.concatenate %257, %236, %257 in 1 : vector<16x1xf32>, vector<16x16xf32>, vector<16x1xf32> -> vector<16x18xf32>
    %260 = tpu.concatenate %258, %259, %258 in 0 : vector<1x18xf32>, vector<16x18xf32>, vector<1x18xf32> -> vector<18x18xf32>
    %cst_72 = arith.constant 0.000000e+00 : f32
    %261 = vector.broadcast %cst_72 : f32 to vector<16x1xf32>
    %cst_73 = arith.constant 0.000000e+00 : f32
    %262 = vector.broadcast %cst_73 : f32 to vector<1x18xf32>
    %263 = tpu.concatenate %261, %244, %261 in 1 : vector<16x1xf32>, vector<16x16xf32>, vector<16x1xf32> -> vector<16x18xf32>
    %264 = tpu.concatenate %262, %263, %262 in 0 : vector<1x18xf32>, vector<16x18xf32>, vector<1x18xf32> -> vector<18x18xf32>
    %cst_74 = arith.constant 0.000000e+00 : f32
    %265 = vector.broadcast %cst_74 : f32 to vector<16x1xf32>
    %cst_75 = arith.constant 0.000000e+00 : f32
    %266 = vector.broadcast %cst_75 : f32 to vector<1x18xf32>
    %267 = tpu.concatenate %265, %252, %265 in 1 : vector<16x1xf32>, vector<16x16xf32>, vector<16x1xf32> -> vector<16x18xf32>
    %268 = tpu.concatenate %266, %267, %266 in 0 : vector<1x18xf32>, vector<16x18xf32>, vector<1x18xf32> -> vector<18x18xf32>
    %cst_76 = arith.constant 0.000000e+00 : f32
    %269 = vector.broadcast %cst_76 : f32 to vector<16x70xf32>
    %270 = tpu.concatenate %256, %256, %256, %256 in 1 : vector<18x18xf32>, vector<18x18xf32>, vector<18x18xf32>, vector<18x18xf32> -> vector<18x72xf32>
    %271 = vector.extract_strided_slice %270 {offsets = [0, 0], sizes = [16, 72], strides = [1, 1]} : vector<18x72xf32> to vector<16x72xf32>
    %c0_77 = arith.constant 0 : index
    %c0_78 = arith.constant 0 : index
    %272 = vector.load %arg2[%c0_77, %c0_78] : memref<36x70xf32, #tpu.memory_space<vmem>>, vector<1x70xf32>
    %273 = vector.extract_strided_slice %271 {offsets = [0, 0], sizes = [16, 70], strides = [1, 1]} : vector<16x72xf32> to vector<16x70xf32>
    %274 = vector.broadcast %272 : vector<1x70xf32> to vector<16x70xf32>
    %275 = arith.mulf %274, %273 : vector<16x70xf32>
    %276 = arith.addf %269, %275 : vector<16x70xf32>
    %c1_79 = arith.constant 1 : index
    %c0_80 = arith.constant 0 : index
    %277 = vector.load %arg2[%c1_79, %c0_80] : memref<36x70xf32, #tpu.memory_space<vmem>>, vector<1x70xf32>
    %278 = vector.extract_strided_slice %271 {offsets = [0, 1], sizes = [16, 70], strides = [1, 1]} : vector<16x72xf32> to vector<16x70xf32>
    %279 = vector.broadcast %277 : vector<1x70xf32> to vector<16x70xf32>
    %280 = arith.mulf %279, %278 : vector<16x70xf32>
    %281 = arith.addf %276, %280 : vector<16x70xf32>
    %c2_81 = arith.constant 2 : index
    %c0_82 = arith.constant 0 : index
    %282 = vector.load %arg2[%c2_81, %c0_82] : memref<36x70xf32, #tpu.memory_space<vmem>>, vector<1x70xf32>
    %283 = vector.extract_strided_slice %271 {offsets = [0, 2], sizes = [16, 70], strides = [1, 1]} : vector<16x72xf32> to vector<16x70xf32>
    %284 = vector.broadcast %282 : vector<1x70xf32> to vector<16x70xf32>
    %285 = arith.mulf %284, %283 : vector<16x70xf32>
    %286 = arith.addf %281, %285 : vector<16x70xf32>
    %287 = vector.extract_strided_slice %270 {offsets = [1, 0], sizes = [16, 72], strides = [1, 1]} : vector<18x72xf32> to vector<16x72xf32>
    %c3_83 = arith.constant 3 : index
    %c0_84 = arith.constant 0 : index
    %288 = vector.load %arg2[%c3_83, %c0_84] : memref<36x70xf32, #tpu.memory_space<vmem>>, vector<1x70xf32>
    %289 = vector.extract_strided_slice %287 {offsets = [0, 0], sizes = [16, 70], strides = [1, 1]} : vector<16x72xf32> to vector<16x70xf32>
    %290 = vector.broadcast %288 : vector<1x70xf32> to vector<16x70xf32>
    %291 = arith.mulf %290, %289 : vector<16x70xf32>
    %292 = arith.addf %286, %291 : vector<16x70xf32>
    %c4_85 = arith.constant 4 : index
    %c0_86 = arith.constant 0 : index
    %293 = vector.load %arg2[%c4_85, %c0_86] : memref<36x70xf32, #tpu.memory_space<vmem>>, vector<1x70xf32>
    %294 = vector.extract_strided_slice %287 {offsets = [0, 1], sizes = [16, 70], strides = [1, 1]} : vector<16x72xf32> to vector<16x70xf32>
    %295 = vector.broadcast %293 : vector<1x70xf32> to vector<16x70xf32>
    %296 = arith.mulf %295, %294 : vector<16x70xf32>
    %297 = arith.addf %292, %296 : vector<16x70xf32>
    %c5_87 = arith.constant 5 : index
    %c0_88 = arith.constant 0 : index
    %298 = vector.load %arg2[%c5_87, %c0_88] : memref<36x70xf32, #tpu.memory_space<vmem>>, vector<1x70xf32>
    %299 = vector.extract_strided_slice %287 {offsets = [0, 2], sizes = [16, 70], strides = [1, 1]} : vector<16x72xf32> to vector<16x70xf32>
    %300 = vector.broadcast %298 : vector<1x70xf32> to vector<16x70xf32>
    %301 = arith.mulf %300, %299 : vector<16x70xf32>
    %302 = arith.addf %297, %301 : vector<16x70xf32>
    %303 = vector.extract_strided_slice %270 {offsets = [2, 0], sizes = [16, 72], strides = [1, 1]} : vector<18x72xf32> to vector<16x72xf32>
    %c6_89 = arith.constant 6 : index
    %c0_90 = arith.constant 0 : index
    %304 = vector.load %arg2[%c6_89, %c0_90] : memref<36x70xf32, #tpu.memory_space<vmem>>, vector<1x70xf32>
    %305 = vector.extract_strided_slice %303 {offsets = [0, 0], sizes = [16, 70], strides = [1, 1]} : vector<16x72xf32> to vector<16x70xf32>
    %306 = vector.broadcast %304 : vector<1x70xf32> to vector<16x70xf32>
    %307 = arith.mulf %306, %305 : vector<16x70xf32>
    %308 = arith.addf %302, %307 : vector<16x70xf32>
    %c7_91 = arith.constant 7 : index
    %c0_92 = arith.constant 0 : index
    %309 = vector.load %arg2[%c7_91, %c0_92] : memref<36x70xf32, #tpu.memory_space<vmem>>, vector<1x70xf32>
    %310 = vector.extract_strided_slice %303 {offsets = [0, 1], sizes = [16, 70], strides = [1, 1]} : vector<16x72xf32> to vector<16x70xf32>
    %311 = vector.broadcast %309 : vector<1x70xf32> to vector<16x70xf32>
    %312 = arith.mulf %311, %310 : vector<16x70xf32>
    %313 = arith.addf %308, %312 : vector<16x70xf32>
    %c8_93 = arith.constant 8 : index
    %c0_94 = arith.constant 0 : index
    %314 = vector.load %arg2[%c8_93, %c0_94] : memref<36x70xf32, #tpu.memory_space<vmem>>, vector<1x70xf32>
    %315 = vector.extract_strided_slice %303 {offsets = [0, 2], sizes = [16, 70], strides = [1, 1]} : vector<16x72xf32> to vector<16x70xf32>
    %316 = vector.broadcast %314 : vector<1x70xf32> to vector<16x70xf32>
    %317 = arith.mulf %316, %315 : vector<16x70xf32>
    %318 = arith.addf %313, %317 : vector<16x70xf32>
    %319 = tpu.concatenate %260, %260, %260, %260 in 1 : vector<18x18xf32>, vector<18x18xf32>, vector<18x18xf32>, vector<18x18xf32> -> vector<18x72xf32>
    %320 = vector.extract_strided_slice %319 {offsets = [0, 0], sizes = [16, 72], strides = [1, 1]} : vector<18x72xf32> to vector<16x72xf32>
    %c9_95 = arith.constant 9 : index
    %c0_96 = arith.constant 0 : index
    %321 = vector.load %arg2[%c9_95, %c0_96] : memref<36x70xf32, #tpu.memory_space<vmem>>, vector<1x70xf32>
    %322 = vector.extract_strided_slice %320 {offsets = [0, 0], sizes = [16, 70], strides = [1, 1]} : vector<16x72xf32> to vector<16x70xf32>
    %323 = vector.broadcast %321 : vector<1x70xf32> to vector<16x70xf32>
    %324 = arith.mulf %323, %322 : vector<16x70xf32>
    %325 = arith.addf %318, %324 : vector<16x70xf32>
    %c10_97 = arith.constant 10 : index
    %c0_98 = arith.constant 0 : index
    %326 = vector.load %arg2[%c10_97, %c0_98] : memref<36x70xf32, #tpu.memory_space<vmem>>, vector<1x70xf32>
    %327 = vector.extract_strided_slice %320 {offsets = [0, 1], sizes = [16, 70], strides = [1, 1]} : vector<16x72xf32> to vector<16x70xf32>
    %328 = vector.broadcast %326 : vector<1x70xf32> to vector<16x70xf32>
    %329 = arith.mulf %328, %327 : vector<16x70xf32>
    %330 = arith.addf %325, %329 : vector<16x70xf32>
    %c11_99 = arith.constant 11 : index
    %c0_100 = arith.constant 0 : index
    %331 = vector.load %arg2[%c11_99, %c0_100] : memref<36x70xf32, #tpu.memory_space<vmem>>, vector<1x70xf32>
    %332 = vector.extract_strided_slice %320 {offsets = [0, 2], sizes = [16, 70], strides = [1, 1]} : vector<16x72xf32> to vector<16x70xf32>
    %333 = vector.broadcast %331 : vector<1x70xf32> to vector<16x70xf32>
    %334 = arith.mulf %333, %332 : vector<16x70xf32>
    %335 = arith.addf %330, %334 : vector<16x70xf32>
    %336 = vector.extract_strided_slice %319 {offsets = [1, 0], sizes = [16, 72], strides = [1, 1]} : vector<18x72xf32> to vector<16x72xf32>
    %c12_101 = arith.constant 12 : index
    %c0_102 = arith.constant 0 : index
    %337 = vector.load %arg2[%c12_101, %c0_102] : memref<36x70xf32, #tpu.memory_space<vmem>>, vector<1x70xf32>
    %338 = vector.extract_strided_slice %336 {offsets = [0, 0], sizes = [16, 70], strides = [1, 1]} : vector<16x72xf32> to vector<16x70xf32>
    %339 = vector.broadcast %337 : vector<1x70xf32> to vector<16x70xf32>
    %340 = arith.mulf %339, %338 : vector<16x70xf32>
    %341 = arith.addf %335, %340 : vector<16x70xf32>
    %c13_103 = arith.constant 13 : index
    %c0_104 = arith.constant 0 : index
    %342 = vector.load %arg2[%c13_103, %c0_104] : memref<36x70xf32, #tpu.memory_space<vmem>>, vector<1x70xf32>
    %343 = vector.extract_strided_slice %336 {offsets = [0, 1], sizes = [16, 70], strides = [1, 1]} : vector<16x72xf32> to vector<16x70xf32>
    %344 = vector.broadcast %342 : vector<1x70xf32> to vector<16x70xf32>
    %345 = arith.mulf %344, %343 : vector<16x70xf32>
    %346 = arith.addf %341, %345 : vector<16x70xf32>
    %c14_105 = arith.constant 14 : index
    %c0_106 = arith.constant 0 : index
    %347 = vector.load %arg2[%c14_105, %c0_106] : memref<36x70xf32, #tpu.memory_space<vmem>>, vector<1x70xf32>
    %348 = vector.extract_strided_slice %336 {offsets = [0, 2], sizes = [16, 70], strides = [1, 1]} : vector<16x72xf32> to vector<16x70xf32>
    %349 = vector.broadcast %347 : vector<1x70xf32> to vector<16x70xf32>
    %350 = arith.mulf %349, %348 : vector<16x70xf32>
    %351 = arith.addf %346, %350 : vector<16x70xf32>
    %352 = vector.extract_strided_slice %319 {offsets = [2, 0], sizes = [16, 72], strides = [1, 1]} : vector<18x72xf32> to vector<16x72xf32>
    %c15_107 = arith.constant 15 : index
    %c0_108 = arith.constant 0 : index
    %353 = vector.load %arg2[%c15_107, %c0_108] : memref<36x70xf32, #tpu.memory_space<vmem>>, vector<1x70xf32>
    %354 = vector.extract_strided_slice %352 {offsets = [0, 0], sizes = [16, 70], strides = [1, 1]} : vector<16x72xf32> to vector<16x70xf32>
    %355 = vector.broadcast %353 : vector<1x70xf32> to vector<16x70xf32>
    %356 = arith.mulf %355, %354 : vector<16x70xf32>
    %357 = arith.addf %351, %356 : vector<16x70xf32>
    %c16_109 = arith.constant 16 : index
    %c0_110 = arith.constant 0 : index
    %358 = vector.load %arg2[%c16_109, %c0_110] : memref<36x70xf32, #tpu.memory_space<vmem>>, vector<1x70xf32>
    %359 = vector.extract_strided_slice %352 {offsets = [0, 1], sizes = [16, 70], strides = [1, 1]} : vector<16x72xf32> to vector<16x70xf32>
    %360 = vector.broadcast %358 : vector<1x70xf32> to vector<16x70xf32>
    %361 = arith.mulf %360, %359 : vector<16x70xf32>
    %362 = arith.addf %357, %361 : vector<16x70xf32>
    %c17_111 = arith.constant 17 : index
    %c0_112 = arith.constant 0 : index
    %363 = vector.load %arg2[%c17_111, %c0_112] : memref<36x70xf32, #tpu.memory_space<vmem>>, vector<1x70xf32>
    %364 = vector.extract_strided_slice %352 {offsets = [0, 2], sizes = [16, 70], strides = [1, 1]} : vector<16x72xf32> to vector<16x70xf32>
    %365 = vector.broadcast %363 : vector<1x70xf32> to vector<16x70xf32>
    %366 = arith.mulf %365, %364 : vector<16x70xf32>
    %367 = arith.addf %362, %366 : vector<16x70xf32>
    %368 = tpu.concatenate %264, %264, %264, %264 in 1 : vector<18x18xf32>, vector<18x18xf32>, vector<18x18xf32>, vector<18x18xf32> -> vector<18x72xf32>
    %369 = vector.extract_strided_slice %368 {offsets = [0, 0], sizes = [16, 72], strides = [1, 1]} : vector<18x72xf32> to vector<16x72xf32>
    %c18_113 = arith.constant 18 : index
    %c0_114 = arith.constant 0 : index
    %370 = vector.load %arg2[%c18_113, %c0_114] : memref<36x70xf32, #tpu.memory_space<vmem>>, vector<1x70xf32>
    %371 = vector.extract_strided_slice %369 {offsets = [0, 0], sizes = [16, 70], strides = [1, 1]} : vector<16x72xf32> to vector<16x70xf32>
    %372 = vector.broadcast %370 : vector<1x70xf32> to vector<16x70xf32>
    %373 = arith.mulf %372, %371 : vector<16x70xf32>
    %374 = arith.addf %367, %373 : vector<16x70xf32>
    %c19_115 = arith.constant 19 : index
    %c0_116 = arith.constant 0 : index
    %375 = vector.load %arg2[%c19_115, %c0_116] : memref<36x70xf32, #tpu.memory_space<vmem>>, vector<1x70xf32>
    %376 = vector.extract_strided_slice %369 {offsets = [0, 1], sizes = [16, 70], strides = [1, 1]} : vector<16x72xf32> to vector<16x70xf32>
    %377 = vector.broadcast %375 : vector<1x70xf32> to vector<16x70xf32>
    %378 = arith.mulf %377, %376 : vector<16x70xf32>
    %379 = arith.addf %374, %378 : vector<16x70xf32>
    %c20_117 = arith.constant 20 : index
    %c0_118 = arith.constant 0 : index
    %380 = vector.load %arg2[%c20_117, %c0_118] : memref<36x70xf32, #tpu.memory_space<vmem>>, vector<1x70xf32>
    %381 = vector.extract_strided_slice %369 {offsets = [0, 2], sizes = [16, 70], strides = [1, 1]} : vector<16x72xf32> to vector<16x70xf32>
    %382 = vector.broadcast %380 : vector<1x70xf32> to vector<16x70xf32>
    %383 = arith.mulf %382, %381 : vector<16x70xf32>
    %384 = arith.addf %379, %383 : vector<16x70xf32>
    %385 = vector.extract_strided_slice %368 {offsets = [1, 0], sizes = [16, 72], strides = [1, 1]} : vector<18x72xf32> to vector<16x72xf32>
    %c21_119 = arith.constant 21 : index
    %c0_120 = arith.constant 0 : index
    %386 = vector.load %arg2[%c21_119, %c0_120] : memref<36x70xf32, #tpu.memory_space<vmem>>, vector<1x70xf32>
    %387 = vector.extract_strided_slice %385 {offsets = [0, 0], sizes = [16, 70], strides = [1, 1]} : vector<16x72xf32> to vector<16x70xf32>
    %388 = vector.broadcast %386 : vector<1x70xf32> to vector<16x70xf32>
    %389 = arith.mulf %388, %387 : vector<16x70xf32>
    %390 = arith.addf %384, %389 : vector<16x70xf32>
    %c22_121 = arith.constant 22 : index
    %c0_122 = arith.constant 0 : index
    %391 = vector.load %arg2[%c22_121, %c0_122] : memref<36x70xf32, #tpu.memory_space<vmem>>, vector<1x70xf32>
    %392 = vector.extract_strided_slice %385 {offsets = [0, 1], sizes = [16, 70], strides = [1, 1]} : vector<16x72xf32> to vector<16x70xf32>
    %393 = vector.broadcast %391 : vector<1x70xf32> to vector<16x70xf32>
    %394 = arith.mulf %393, %392 : vector<16x70xf32>
    %395 = arith.addf %390, %394 : vector<16x70xf32>
    %c23_123 = arith.constant 23 : index
    %c0_124 = arith.constant 0 : index
    %396 = vector.load %arg2[%c23_123, %c0_124] : memref<36x70xf32, #tpu.memory_space<vmem>>, vector<1x70xf32>
    %397 = vector.extract_strided_slice %385 {offsets = [0, 2], sizes = [16, 70], strides = [1, 1]} : vector<16x72xf32> to vector<16x70xf32>
    %398 = vector.broadcast %396 : vector<1x70xf32> to vector<16x70xf32>
    %399 = arith.mulf %398, %397 : vector<16x70xf32>
    %400 = arith.addf %395, %399 : vector<16x70xf32>
    %401 = vector.extract_strided_slice %368 {offsets = [2, 0], sizes = [16, 72], strides = [1, 1]} : vector<18x72xf32> to vector<16x72xf32>
    %c24_125 = arith.constant 24 : index
    %c0_126 = arith.constant 0 : index
    %402 = vector.load %arg2[%c24_125, %c0_126] : memref<36x70xf32, #tpu.memory_space<vmem>>, vector<1x70xf32>
    %403 = vector.extract_strided_slice %401 {offsets = [0, 0], sizes = [16, 70], strides = [1, 1]} : vector<16x72xf32> to vector<16x70xf32>
    %404 = vector.broadcast %402 : vector<1x70xf32> to vector<16x70xf32>
    %405 = arith.mulf %404, %403 : vector<16x70xf32>
    %406 = arith.addf %400, %405 : vector<16x70xf32>
    %c25_127 = arith.constant 25 : index
    %c0_128 = arith.constant 0 : index
    %407 = vector.load %arg2[%c25_127, %c0_128] : memref<36x70xf32, #tpu.memory_space<vmem>>, vector<1x70xf32>
    %408 = vector.extract_strided_slice %401 {offsets = [0, 1], sizes = [16, 70], strides = [1, 1]} : vector<16x72xf32> to vector<16x70xf32>
    %409 = vector.broadcast %407 : vector<1x70xf32> to vector<16x70xf32>
    %410 = arith.mulf %409, %408 : vector<16x70xf32>
    %411 = arith.addf %406, %410 : vector<16x70xf32>
    %c26_129 = arith.constant 26 : index
    %c0_130 = arith.constant 0 : index
    %412 = vector.load %arg2[%c26_129, %c0_130] : memref<36x70xf32, #tpu.memory_space<vmem>>, vector<1x70xf32>
    %413 = vector.extract_strided_slice %401 {offsets = [0, 2], sizes = [16, 70], strides = [1, 1]} : vector<16x72xf32> to vector<16x70xf32>
    %414 = vector.broadcast %412 : vector<1x70xf32> to vector<16x70xf32>
    %415 = arith.mulf %414, %413 : vector<16x70xf32>
    %416 = arith.addf %411, %415 : vector<16x70xf32>
    %417 = tpu.concatenate %268, %268, %268, %268 in 1 : vector<18x18xf32>, vector<18x18xf32>, vector<18x18xf32>, vector<18x18xf32> -> vector<18x72xf32>
    %418 = vector.extract_strided_slice %417 {offsets = [0, 0], sizes = [16, 72], strides = [1, 1]} : vector<18x72xf32> to vector<16x72xf32>
    %c27_131 = arith.constant 27 : index
    %c0_132 = arith.constant 0 : index
    %419 = vector.load %arg2[%c27_131, %c0_132] : memref<36x70xf32, #tpu.memory_space<vmem>>, vector<1x70xf32>
    %420 = vector.extract_strided_slice %418 {offsets = [0, 0], sizes = [16, 70], strides = [1, 1]} : vector<16x72xf32> to vector<16x70xf32>
    %421 = vector.broadcast %419 : vector<1x70xf32> to vector<16x70xf32>
    %422 = arith.mulf %421, %420 : vector<16x70xf32>
    %423 = arith.addf %416, %422 : vector<16x70xf32>
    %c28_133 = arith.constant 28 : index
    %c0_134 = arith.constant 0 : index
    %424 = vector.load %arg2[%c28_133, %c0_134] : memref<36x70xf32, #tpu.memory_space<vmem>>, vector<1x70xf32>
    %425 = vector.extract_strided_slice %418 {offsets = [0, 1], sizes = [16, 70], strides = [1, 1]} : vector<16x72xf32> to vector<16x70xf32>
    %426 = vector.broadcast %424 : vector<1x70xf32> to vector<16x70xf32>
    %427 = arith.mulf %426, %425 : vector<16x70xf32>
    %428 = arith.addf %423, %427 : vector<16x70xf32>
    %c29_135 = arith.constant 29 : index
    %c0_136 = arith.constant 0 : index
    %429 = vector.load %arg2[%c29_135, %c0_136] : memref<36x70xf32, #tpu.memory_space<vmem>>, vector<1x70xf32>
    %430 = vector.extract_strided_slice %418 {offsets = [0, 2], sizes = [16, 70], strides = [1, 1]} : vector<16x72xf32> to vector<16x70xf32>
    %431 = vector.broadcast %429 : vector<1x70xf32> to vector<16x70xf32>
    %432 = arith.mulf %431, %430 : vector<16x70xf32>
    %433 = arith.addf %428, %432 : vector<16x70xf32>
    %434 = vector.extract_strided_slice %417 {offsets = [1, 0], sizes = [16, 72], strides = [1, 1]} : vector<18x72xf32> to vector<16x72xf32>
    %c30_137 = arith.constant 30 : index
    %c0_138 = arith.constant 0 : index
    %435 = vector.load %arg2[%c30_137, %c0_138] : memref<36x70xf32, #tpu.memory_space<vmem>>, vector<1x70xf32>
    %436 = vector.extract_strided_slice %434 {offsets = [0, 0], sizes = [16, 70], strides = [1, 1]} : vector<16x72xf32> to vector<16x70xf32>
    %437 = vector.broadcast %435 : vector<1x70xf32> to vector<16x70xf32>
    %438 = arith.mulf %437, %436 : vector<16x70xf32>
    %439 = arith.addf %433, %438 : vector<16x70xf32>
    %c31_139 = arith.constant 31 : index
    %c0_140 = arith.constant 0 : index
    %440 = vector.load %arg2[%c31_139, %c0_140] : memref<36x70xf32, #tpu.memory_space<vmem>>, vector<1x70xf32>
    %441 = vector.extract_strided_slice %434 {offsets = [0, 1], sizes = [16, 70], strides = [1, 1]} : vector<16x72xf32> to vector<16x70xf32>
    %442 = vector.broadcast %440 : vector<1x70xf32> to vector<16x70xf32>
    %443 = arith.mulf %442, %441 : vector<16x70xf32>
    %444 = arith.addf %439, %443 : vector<16x70xf32>
    %c32_141 = arith.constant 32 : index
    %c0_142 = arith.constant 0 : index
    %445 = vector.load %arg2[%c32_141, %c0_142] : memref<36x70xf32, #tpu.memory_space<vmem>>, vector<1x70xf32>
    %446 = vector.extract_strided_slice %434 {offsets = [0, 2], sizes = [16, 70], strides = [1, 1]} : vector<16x72xf32> to vector<16x70xf32>
    %447 = vector.broadcast %445 : vector<1x70xf32> to vector<16x70xf32>
    %448 = arith.mulf %447, %446 : vector<16x70xf32>
    %449 = arith.addf %444, %448 : vector<16x70xf32>
    %450 = vector.extract_strided_slice %417 {offsets = [2, 0], sizes = [16, 72], strides = [1, 1]} : vector<18x72xf32> to vector<16x72xf32>
    %c33_143 = arith.constant 33 : index
    %c0_144 = arith.constant 0 : index
    %451 = vector.load %arg2[%c33_143, %c0_144] : memref<36x70xf32, #tpu.memory_space<vmem>>, vector<1x70xf32>
    %452 = vector.extract_strided_slice %450 {offsets = [0, 0], sizes = [16, 70], strides = [1, 1]} : vector<16x72xf32> to vector<16x70xf32>
    %453 = vector.broadcast %451 : vector<1x70xf32> to vector<16x70xf32>
    %454 = arith.mulf %453, %452 : vector<16x70xf32>
    %455 = arith.addf %449, %454 : vector<16x70xf32>
    %c34_145 = arith.constant 34 : index
    %c0_146 = arith.constant 0 : index
    %456 = vector.load %arg2[%c34_145, %c0_146] : memref<36x70xf32, #tpu.memory_space<vmem>>, vector<1x70xf32>
    %457 = vector.extract_strided_slice %450 {offsets = [0, 1], sizes = [16, 70], strides = [1, 1]} : vector<16x72xf32> to vector<16x70xf32>
    %458 = vector.broadcast %456 : vector<1x70xf32> to vector<16x70xf32>
    %459 = arith.mulf %458, %457 : vector<16x70xf32>
    %460 = arith.addf %455, %459 : vector<16x70xf32>
    %c35_147 = arith.constant 35 : index
    %c0_148 = arith.constant 0 : index
    %461 = vector.load %arg2[%c35_147, %c0_148] : memref<36x70xf32, #tpu.memory_space<vmem>>, vector<1x70xf32>
    %462 = vector.extract_strided_slice %450 {offsets = [0, 2], sizes = [16, 70], strides = [1, 1]} : vector<16x72xf32> to vector<16x70xf32>
    %463 = vector.broadcast %461 : vector<1x70xf32> to vector<16x70xf32>
    %464 = arith.mulf %463, %462 : vector<16x70xf32>
    %465 = arith.addf %460, %464 : vector<16x70xf32>
    %466 = vector.extract_strided_slice %465 {offsets = [0, 0], sizes = [16, 16], strides = [1, 1]} : vector<16x70xf32> to vector<16x16xf32>
    %467 = vector.extract_strided_slice %465 {offsets = [0, 18], sizes = [16, 16], strides = [1, 1]} : vector<16x70xf32> to vector<16x16xf32>
    %468 = vector.extract_strided_slice %465 {offsets = [0, 36], sizes = [16, 16], strides = [1, 1]} : vector<16x70xf32> to vector<16x16xf32>
    %469 = vector.extract_strided_slice %465 {offsets = [0, 54], sizes = [16, 16], strides = [1, 1]} : vector<16x70xf32> to vector<16x16xf32>
    %470 = tpu.concatenate %466, %467, %468, %469 in 1 : vector<16x16xf32>, vector<16x16xf32>, vector<16x16xf32>, vector<16x16xf32> -> vector<16x64xf32>
    %c0_149 = arith.constant 0 : index
    %c0_150 = arith.constant 0 : index
    %c0_151 = arith.constant 0 : index
    %471 = vector.load %arg4[%c0_149, %c0_150, %c0_151] : memref<1x16x64xf32, #tpu.memory_space<vmem>>, vector<1x16x64xf32>
    %472 = vector.shape_cast %471 : vector<1x16x64xf32> to vector<16x64xf32>
    %473 = vector.shape_cast %470 : vector<16x64xf32> to vector<1x16x64xf32>
    tpu.vector_store %arg4[%c0_149, %c0_150, %c0_151], %473 {strides = array<i32>} : memref<1x16x64xf32, #tpu.memory_space<vmem>>, vector<1x16x64xf32>,
    return
  }
  func.func @transform_0(%arg0: i32) -> (i32, i32) {
    %c0_i32 = arith.constant 0 : i32
    %c0_i32_0 = arith.constant 0 : i32
    %c0_i32_1 = arith.constant 0 : i32
    return %c0_i32, %c0_i32_0 : i32, i32
  }
  func.func @transform_1(%arg0: i32) -> (i32, i32) {
    %c0_i32 = arith.constant 0 : i32
    %c0_i32_0 = arith.constant 0 : i32
    %c0_i32_1 = arith.constant 0 : i32
    return %c0_i32, %c0_i32_0 : i32, i32
  }
  func.func @transform_2(%arg0: i32) -> (i32, i32, i32, i32) {
    %c0_i32 = arith.constant 0 : i32
    %c0_i32_0 = arith.constant 0 : i32
    %c0_i32_1 = arith.constant 0 : i32
    %c0_i32_2 = arith.constant 0 : i32
    return %arg0, %c0_i32, %c0_i32_0, %c0_i32_1 : i32, i32, i32, i32
  }
  func.func @transform_3(%arg0: i32) -> (i32, i32, i32) {
    %c0_i32 = arith.constant 0 : i32
    %c0_i32_0 = arith.constant 0 : i32
    %c0_i32_1 = arith.constant 0 : i32
    return %arg0, %c0_i32, %c0_i32_0 : i32, i32, i32
  }
}

</mosaic_0001>

<bundles_post_ra>
// kernel: paconv_forward.1
= control target key start
LH: loop header
LB: loop body
LE: loop exit
PB: predicated region body
PF: predicated region fallthrough
CT: control target
= control target key end

     0   :  { %s2012_s12 = smov 0   ;;  %s3206_s0 = inlined_call_operand.vmem [shape: f32[36,70], index: 0, kind: input, shape index: {}]   ;;  %s3207_s1 = inlined_call_operand.vmem [shape: f32[36,70], index: 1, kind: input, shape index: {}]   ;;  %s3208_s2 = inlined_call_operand.vmem [shape: f32[2,4,16,16], index: 2, kind: input, shape index: {}]   ;;  %s3209_s3 = inlined_call_operand.vmem [shape: f32[2,16,64], index: 3, kind: output, shape index: {}]  }
   0x1 LB: > { %s1829_s13 = sadd.s32 4294967295, %s1979_s12   ;;  %p1833_p0 = scmp.ge.s32.totalorder %s1979_s12, 1  ;;  %s1979_s12 = sphi %s2012_s12, %s13_s12  }
   0x2   : > { %p137_p1 = scmp.lt.s32.totalorder %s1979_s12, 3 }
   0x4   : > { %p138_p2 = pnand %p1833_p0, %p137_p1 }
   0x5   : > { %p161_p3 = scmp.lt.s32.totalorder (!%p138_p2), %s1829_s13, 1  ;;  %s1981_s18 = smov (!%p138_p2), 1  }
   0x6   : > { %141 = sbr.rel (%p138_p2) target bundleno = 1214 (0x4be), region = 32  ;;  %s1982_s19 = smov (!%p138_p2), 18  }
   0x7   : > { %s1983_s20 = smov (!%p138_p2), 36   ;;  %s1984_s21 = smov (!%p138_p2), 54  }
   0x8   : > { %s1985_s22 = smov (!%p138_p2), 126   ;;  %s1986_s23 = smov (!%p138_p2), 127  }
   0x9   : > { %s1987_s16 = smov (!%p138_p2), 111   ;;  %s1988_s24 = smov (!%p138_p2), 93  }
   0xa   : > { %s1989_s25 = smov (!%p138_p2), 75   ;;  %s1991_s26 = smov (!%p138_p2), 122  }
   0xb   : > { %s3211_s13 = smov (!%p161_p3, %s1829_s13), 1  ;;  %vm190_vm0 = vcmask 7168   ;;  %vm193_vm1 = vcmask 138240   ;;  %vm198_vm2 = vcmask 1040384   ;;  %vm302_vm3 = vcmask 146432  }
   0xc   : > { %s1846_s14 = sshll.u32 %s3211_s13, 6  ;;  %vm306_vm4 = vcmask 293888   ;;  %vm310_vm5 = vcmask 441344   ;;  %vm354_vm6 = vcmask 1046528   ;;  %vm402_vm7 = vcmask 1045504   ;;  %s1847_s27 = sshll.u32 %s3211_s13, 4 }
   0xd   : > { %s2026_s17 = scalar_lea.vmem %s3208_s2, %s1846_s14  ;;  %vm1765_vm8 = vcmask 261120   ;;  %vm1762_vm9 = vcmask 130048   ;;  %vm1768_vm10 = vcmask 392192   ;;  %vm1771_vm11 = vcmask 523264  }
   0xe   : > { %v171_v0 = vld [vmem:[%s2026_s17] sm:$0xff]  ;;  %v1838_v1 = vld [vmem:[%s2026_s17 + $0x10] sm:$0xff]  ;;  %v1839_v3 = vld [vmem:[%s2026_s17 + $0x18] sm:$0xff] }
   0xf   : > { %184 = vrot.lane.b32.xlu0 %v171_v0, %s1981_s18  ;;  %209 = vrot.lane.b32.xlu1 %v1838_v1, %s1981_s18  ;;  %v942_v2 = vsub.f32 0.0, %v1838_v1  ;;  %v1840_v4 = vld [vmem:[%s2026_s17 + $0x20] sm:$0xff]  ;;  %v943_v5 = vsub.f32 0.0, %v1839_v3  ;;  %v1841_v8 = vld [vmem:[%s2026_s17 + $0x28] sm:$0xff] }
  0x10   : > { %231 = vrot.lane.b32.xlu2 %v1840_v4, %s1981_s18  ;;  %v962_v6 = vsub.f32 0.0, %v1840_v4  ;;  %v963_v10 = vsub.f32 0.0, %v1841_v8  ;;  %v172_v12 = vld [vmem:[%s2026_s17 + $0x8] sm:$0xff]  ;;  %v2041_v15 = vld [vmem:[%s2026_s17 + $0x30] sm:$0xff]  ;;  %v2044_v18 = vld [vmem:[%s2026_s17 + $0x38] sm:$0xff] }
  0x11   : > { %v944_v7 = vmul.f32 1.442695, %v942_v2  ;;  %v946_v9 = vmul.f32 1.442695, %v943_v5 }
  0x12   : > { %v964_v11 = vmul.f32 1.442695, %v962_v6  ;;  %v966_v13 = vmul.f32 1.442695, %v963_v10 }
  0x13   : > { %1939 = vpow2.f32 %v944_v7 }
  0x14   : > { %1941 = vpow2.f32 %v946_v9 }
  0x15   : > { %1943 = vpow2.f32 %v964_v11 }
  0x16   : > { %1945 = vpow2.f32 %v966_v13 }
  0x17   : > { %186 = vrot.lane.b32.xlu0 %v172_v12, %s1981_s18  ;;  %211 = vrot.lane.b32.xlu1 %v1839_v3, %s1981_s18 }
  0x18   : > { %233 = vrot.lane.b32.xlu2 %v1841_v8, %s1981_s18 }
  0x19   : > { %v1940_v14 = vpop.eup %1939 }
  0x1a   : > { %v1942_v16 = vpop.eup %1941  ;;  %v948_v17 = vadd.f32 1.0, %v1940_v14 }
  0x1b   : > { %v1944_v19 = vpop.eup %1943  ;;  %v949_v20 = vadd.f32 1.0, %v1942_v16 }
  0x1c   : > { %v1946_v21 = vpop.eup %1945  ;;  %1947 = vrcp.f32 %v948_v17  ;;  %v968_v22 = vadd.f32 1.0, %v1944_v19 }
  0x1d   : > { %1949 = vrcp.f32 %v949_v20  ;;  %v969_v23 = vadd.f32 1.0, %v1946_v21 }
  0x1e   : > { %1951 = vrcp.f32 %v968_v22 }
  0x1f   : > { %253 = vrot.lane.b32.xlu0 %v2041_v15, %s1981_s18  ;;  %255 = vrot.lane.b32.xlu1 %v2044_v18, %s1981_s18  ;;  %1953 = vrcp.f32 %v969_v23 }
  0x22   : > { %v1948_v24 = vpop.eup %1947 }
  0x23   : > { %v1950_v25 = vpop.eup %1949  ;;  %954 = vrot.lane.b32.xlu2 %v1948_v24, %s1982_s19 }
  0x24   : > { %v1952_v26 = vpop.eup %1951 }
  0x25   : > { %v1954_v27 = vpop.eup %1953 }
  0x27   : > { %974 = vrot.lane.b32.xlu1 %v1952_v26, %s1983_s20  ;;  %956 = vrot.lane.b32.xlu0 %v1950_v25, %s1982_s19 }
  0x2b   : > { %976 = vrot.lane.b32.xlu2 %v1954_v27, %s1983_s20 }
  0x6a   : > { %v232_v50 = vpop.permute.xlu2 %231 }
  0x6b   : > { %v237_v51 = vsel %vm190_vm0, 0.0, %v232_v50 }
  0x6c   : > { %v239_v52 = vsel %vm193_vm1, %v237_v51, 0.0 }
  0x6d   : > { %v243_v53 = vrot.slane %v239_v52, 7 }
  0x6f   : > { %v2116_v56 = vsel %vm198_vm2, 0.0, %v243_v53 }
  0x72   : > { %v234_v54 = vpop.permute.xlu2 %233 }
  0x73   : > { %v238_v55 = vsel %vm190_vm0, 0.0, %v234_v54 }
  0x74   : > { %v240_v57 = vsel %vm193_vm1, %v238_v55, 0.0 }
  0x75   : > { %v244_v58 = vrot.slane %v240_v57, 7 }
  0x77   : > { %v2126_v59 = vsel %vm198_vm2, %v244_v58, 0.0  ;;  %v2133_v60 = vsel %vm198_vm2, %v243_v53, %v244_v58 }
  0x7d   : > { %v2150_v5 = vpop.permute.xlu2 %954 }
  0x81   : > { %v185_v28 = vpop.permute.xlu0 %184  ;;  %v210_v39 = vpop.permute.xlu1 %209 }
  0x82   : > { %v191_v29 = vsel %vm190_vm0, 0.0, %v185_v28  ;;  %v215_v40 = vsel %vm190_vm0, 0.0, %v210_v39 }
  0x83   : > { %v194_v30 = vsel %vm193_vm1, %v191_v29, 0.0  ;;  %v217_v41 = vsel %vm193_vm1, %v215_v40, 0.0 }
  0x84   : > { %v199_v31 = vrot.slane %v194_v30, 7  ;;  %v221_v42 = vrot.slane %v217_v41, 7 }
  0x85   : > { %v2168_v9 = vpop.permute.xlu2 %976 }
  0x86   : > { %v2057_v32 = vsel %vm198_vm2, 0.0, %v199_v31  ;;  %v2085_v45 = vsel %vm198_vm2, 0.0, %v221_v42 }
  0x87   : > { %275 = vrot.lane.b32.xlu2 %v2057_v32, %s1982_s19 }
  0x89   : > { %v187_v33 = vpop.permute.xlu0 %186  ;;  %v212_v43 = vpop.permute.xlu1 %211 }
  0x8a   : > { %v192_v34 = vsel %vm190_vm0, 0.0, %v187_v33  ;;  %v216_v44 = vsel %vm190_vm0, 0.0, %v212_v43 }
  0x8b   : > { %v195_v35 = vsel %vm193_vm1, %v192_v34, 0.0  ;;  %v218_v46 = vsel %vm193_vm1, %v216_v44, 0.0  ;;  %v1868_v34 = vld [vmem:[%s3206_s0 + $0x6] ss:$0 sm:$0xff] }
  0x8c   : > { %v200_v36 = vrot.slane %v195_v35, 7  ;;  %v222_v47 = vrot.slane %v218_v46, 7 }
  0x8e   : > { %v2064_v37 = vsel %vm198_vm2, %v200_v36, 0.0  ;;  %v2067_v38 = vsel %vm198_vm2, %v199_v31, %v200_v36  ;;  %v2095_v48 = vsel %vm198_vm2, %v222_v47, 0.0  ;;  %v2102_v49 = vsel %vm198_vm2, %v221_v42, %v222_v47  ;;  %v1867_v31 = vld [vmem:[%s3206_s0 + $0x3] ss:$0 sm:$0xff] }
  0x8f   : > { %284 = vrot.lane.b32.xlu2 %v2057_v32, %s1983_s20  ;;  %279 = vrot.lane.b32.xlu1 %v2064_v37, %s1982_s19 }
  0x90   : > { %277 = vrot.lane.b32.xlu0 %v2067_v38, %s1982_s19 }
  0x91   : > { %v254_v61 = vpop.permute.xlu0 %253  ;;  %v256_v0 = vpop.permute.xlu1 %255 }
  0x92   : > { %v259_v62 = vsel %vm190_vm0, 0.0, %v254_v61  ;;  %v260_v2 = vsel %vm190_vm0, 0.0, %v256_v0 }
  0x93   : > { %v261_v63 = vsel %vm193_vm1, %v259_v62, 0.0  ;;  %v262_v4 = vsel %vm193_vm1, %v260_v2, 0.0 }
  0x94   : > { %v265_v1 = vrot.slane %v261_v63, 7  ;;  %v266_v6 = vrot.slane %v262_v4, 7 }
  0x96   : > { %v2147_v3 = vsel %vm198_vm2, 0.0, %v265_v1  ;;  %v2159_v7 = vsel %vm198_vm2, %v266_v6, 0.0  ;;  %v2162_v8 = vsel %vm198_vm2, %v265_v1, %v266_v6 }
  0x97   : > { %293 = vrot.lane.b32.xlu2 %v2057_v32, %s1984_s21  ;;  %288 = vrot.lane.b32.xlu1 %v2064_v37, %s1983_s20 }
  0x98   : > { %286 = vrot.lane.b32.xlu0 %v2067_v38, %s1983_s20 }
  0x99   : > { %v2192_v17 = vpop.permute.xlu1 %974  ;;  %v2194_v19 = vpop.permute.xlu0 %956 }
  0x9f   : > { %443 = vrot.lane.b32.xlu2 %v2085_v45, %s1982_s19  ;;  %297 = vrot.lane.b32.xlu1 %v2064_v37, %s1984_s21 }
  0xa0   : > { %295 = vrot.lane.b32.xlu0 %v2067_v38, %s1984_s21 }
  0xa7   : > { %452 = vrot.lane.b32.xlu2 %v2085_v45, %s1983_s20  ;;  %447 = vrot.lane.b32.xlu1 %v2095_v48, %s1982_s19 }
  0xa8   : > { %445 = vrot.lane.b32.xlu0 %v2102_v49, %s1982_s19 }
  0xaf   : > { %461 = vrot.lane.b32.xlu2 %v2085_v45, %s1984_s21  ;;  %456 = vrot.lane.b32.xlu1 %v2095_v48, %s1983_s20 }
  0xb0   : > { %454 = vrot.lane.b32.xlu0 %v2102_v49, %s1983_s20 }
  0xb7   : > { %606 = vrot.lane.b32.xlu2 %v2116_v56, %s1982_s19  ;;  %465 = vrot.lane.b32.xlu1 %v2095_v48, %s1984_s21 }
  0xb8   : > { %463 = vrot.lane.b32.xlu0 %v2102_v49, %s1984_s21 }
  0xbf   : > { %615 = vrot.lane.b32.xlu2 %v2116_v56, %s1983_s20  ;;  %610 = vrot.lane.b32.xlu1 %v2126_v59, %s1982_s19 }
  0xc0   : > { %608 = vrot.lane.b32.xlu0 %v2133_v60, %s1982_s19 }
  0xc7   : > { %624 = vrot.lane.b32.xlu2 %v2116_v56, %s1984_s21  ;;  %619 = vrot.lane.b32.xlu1 %v2126_v59, %s1983_s20 }
  0xc8   : > { %617 = vrot.lane.b32.xlu0 %v2133_v60, %s1983_s20 }
  0xcf   : > { %628 = vrot.lane.b32.xlu1 %v2126_v59, %s1984_s21  ;;  %769 = vrot.lane.b32.xlu2 %v2147_v3, %s1982_s19 }
  0xd0   : > { %626 = vrot.lane.b32.xlu0 %v2133_v60, %s1984_s21 }
  0xd7   : > { %773 = vrot.lane.b32.xlu1 %v2159_v7, %s1982_s19  ;;  %778 = vrot.lane.b32.xlu2 %v2147_v3, %s1983_s20 }
  0xd8   : > { %771 = vrot.lane.b32.xlu0 %v2162_v8, %s1982_s19 }
  0xdf   : > { %782 = vrot.lane.b32.xlu1 %v2159_v7, %s1983_s20  ;;  %787 = vrot.lane.b32.xlu2 %v2147_v3, %s1984_s21 }
  0xe0   : > { %780 = vrot.lane.b32.xlu0 %v2162_v8, %s1983_s20 }
  0xe1   : > { %v276_v10 = vpop.permute.xlu2 %275 }
  0xe2   : > { %v303_v12 = vsel %vm302_vm3, %v2057_v32, %v276_v10 }
  0xe7   : > { %791 = vrot.lane.b32.xlu1 %v2159_v7, %s1984_s21 }
  0xe8   : > { %789 = vrot.lane.b32.xlu0 %v2162_v8, %s1984_s21 }
  0xe9   : > { %v285_v11 = vpop.permute.xlu2 %284 }
  0xea   : > { %v307_v13 = vsel %vm306_vm4, %v303_v12, %v285_v11 }
  0xf1   : > { %v294_v14 = vpop.permute.xlu2 %293 }
  0xf2   : > { %v2186_v16 = vsel %vm310_vm5, %v307_v13, %v294_v14  ;;  %v1869_v13 = vld [vmem:[%s3206_s0 + $0xc] ss:$0 sm:$0xff]  ;;  %v1870_v14 = vld [vmem:[%s3206_s0 + $0xf] ss:$0 sm:$0xff] }
  0xf3   : > { %336 = vrot.lane.b32.xlu1 %v2186_v16, %s1985_s22  ;;  %324 = vrot.lane.b32.xlu2 %v2186_v16, %s1986_s23  ;;  %v348_v44 = vmul.f32 %v1867_v31, %v2186_v16 }
  0xf5   : > { %v355_v52 = vrot.slane %v348_v44, 1 }
  0xf9   : > { %v444_v20 = vpop.permute.xlu2 %443 }
  0xfa   : > { %v470_v24 = vsel %vm302_vm3, %v2085_v45, %v444_v20 }
 0x101   : > { %v453_v21 = vpop.permute.xlu2 %452  ;;  %v280_v22 = vpop.permute.xlu1 %279 }
 0x102   : > { %v278_v23 = vpop.permute.xlu0 %277  ;;  %v473_v25 = vsel %vm306_vm4, %v470_v24, %v453_v21  ;;  %v305_v30 = vsel %vm302_vm3, %v2064_v37, %v280_v22 }
 0x103   : > { %v304_v36 = vsel %vm302_vm3, %v2067_v38, %v278_v23  ;;  %v396_v38 = vmul.f32 %v1868_v34, %v2186_v16 }
 0x105   : > { %v403_v57 = vrot.slane %v396_v38, 2 }
 0x109   : > { %v462_v26 = vpop.permute.xlu2 %461  ;;  %v289_v27 = vpop.permute.xlu1 %288 }
 0x10a   : > { %v2200_v28 = vsel %vm310_vm5, %v473_v25, %v462_v26  ;;  %v287_v29 = vpop.permute.xlu0 %286  ;;  %v309_v32 = vsel %vm306_vm4, %v305_v30, %v289_v27 }
 0x10b   : > { %501 = vrot.lane.b32.xlu1 %v2200_v28, %s1985_s22  ;;  %v308_v37 = vsel %vm306_vm4, %v304_v36, %v287_v29  ;;  %v513_v29 = vmul.f32 %v1869_v13, %v2200_v28 }
 0x111   : > { %v607_v33 = vpop.permute.xlu2 %606  ;;  %v298_v35 = vpop.permute.xlu1 %297 }
 0x112   : > { %v2216_v39 = vsel %vm310_vm5, %v309_v32, %v298_v35  ;;  %v296_v40 = vpop.permute.xlu0 %295  ;;  %v633_v1 = vsel %vm302_vm3, %v2116_v56, %v607_v33 }
 0x113   : > { %v350_v41 = vmul.f32 %v1867_v31, %v2216_v39  ;;  %v398_v42 = vmul.f32 %v1868_v34, %v2216_v39  ;;  %v2222_v43 = vsel %vm310_vm5, %v308_v37, %v296_v40 }
 0x114   : > { %338 = vrot.lane.b32.xlu2 %v2222_v43, %s1985_s22  ;;  %326 = vrot.lane.b32.xlu0 %v2222_v43, %s1986_s23  ;;  %v349_v46 = vmul.f32 %v1867_v31, %v2222_v43  ;;  %v397_v47 = vmul.f32 %v1868_v34, %v2222_v43  ;;  %v519_v34 = vrot.slane %v513_v29, 1  ;;  %v414_v29 = vrot.slane %v2186_v16, 2 }
 0x115   : > { %v358_v45 = vrot.slane %v350_v41, 1  ;;  %v406_v50 = vrot.slane %v398_v42, 2 }
 0x116   : > { %v356_v51 = vrot.slane %v349_v46, 1  ;;  %v404_v53 = vrot.slane %v397_v47, 2 }
 0x118   : > { %v2233_v61 = vsel %vm354_vm6, %v356_v51, %v358_v45  ;;  %v2236_v62 = vsel %vm354_vm6, %v355_v52, %v356_v51  ;;  %v2239_v63 = vsel %vm402_vm7, %v404_v53, %v406_v50  ;;  %v2242_v0 = vsel %vm402_vm7, %v403_v57, %v404_v53 }
 0x119   : > { %v616_v54 = vpop.permute.xlu2 %615  ;;  %v448_v55 = vpop.permute.xlu1 %447  ;;  %v368_v57 = vrot.slane %v2222_v43, 1 }
 0x11a   : > { %v446_v58 = vpop.permute.xlu0 %445  ;;  %v636_v2 = vsel %vm306_vm4, %v633_v1, %v616_v54  ;;  %v472_v12 = vsel %vm302_vm3, %v2095_v48, %v448_v55  ;;  %v370_v55 = vrot.slane %v2216_v39, 1 }
 0x11b   : > { %v471_v22 = vsel %vm302_vm3, %v2102_v49, %v446_v58  ;;  %v560_v49 = vmul.f32 %v1870_v14, %v2200_v28 }
 0x11c   : > { %489 = vrot.lane.b32.xlu2 %v2200_v28, %s1986_s23 }
 0x11d   : > { %v566_v41 = vrot.slane %v560_v49, 2 }
 0x121   : > { %v625_v4 = vpop.permute.xlu2 %624  ;;  %v457_v6 = vpop.permute.xlu1 %456 }
 0x122   : > { %v2250_v10 = vsel %vm310_vm5, %v636_v2, %v625_v4  ;;  %v455_v11 = vpop.permute.xlu0 %454  ;;  %v475_v56 = vsel %vm306_vm4, %v472_v12, %v457_v6  ;;  %v1872_v2 = vld [vmem:[%s3206_s0 + $0x18] ss:$0 sm:$0xff] }
 0x123   : > { %664 = vrot.lane.b32.xlu1 %v2250_v10, %s1985_s22  ;;  %v474_v48 = vsel %vm306_vm4, %v471_v22, %v455_v11  ;;  %v723_v22 = vmul.f32 %v1872_v2, %v2250_v10 }
 0x129   : > { %v466_v20 = vpop.permute.xlu1 %465  ;;  %v770_v21 = vpop.permute.xlu2 %769 }
 0x12a   : > { %v2266_v23 = vsel %vm310_vm5, %v475_v56, %v466_v20  ;;  %v464_v24 = vpop.permute.xlu0 %463  ;;  %v796_v47 = vsel %vm302_vm3, %v2147_v3, %v770_v21  ;;  %v1871_v3 = vld [vmem:[%s3206_s0 + $0x15] ss:$0 sm:$0xff]  ;;  %v415_v21 = vrot.slane %v2222_v43, 2 }
 0x12b   : > { %v515_v25 = vmul.f32 %v1869_v13, %v2266_v23  ;;  %v562_v26 = vmul.f32 %v1870_v14, %v2266_v23  ;;  %v2272_v27 = vsel %vm310_vm5, %v474_v48, %v464_v24  ;;  %v676_v20 = vmul.f32 %v1871_v3, %v2250_v10 }
 0x12c   : > { %503 = vrot.lane.b32.xlu2 %v2272_v27, %s1985_s22  ;;  %491 = vrot.lane.b32.xlu0 %v2272_v27, %s1986_s23  ;;  %v514_v31 = vmul.f32 %v1869_v13, %v2272_v27  ;;  %v561_v32 = vmul.f32 %v1870_v14, %v2272_v27 }
 0x12d   : > { %v522_v30 = vrot.slane %v515_v25, 1  ;;  %v569_v33 = vrot.slane %v562_v26, 2  ;;  %v682_v49 = vrot.slane %v676_v20, 1 }
 0x12e   : > { %v520_v35 = vrot.slane %v514_v31, 1  ;;  %v567_v36 = vrot.slane %v561_v32, 2 }
 0x130   : > { %v2283_v44 = vsel %vm354_vm6, %v519_v34, %v520_v35  ;;  %v2286_v38 = vsel %vm354_vm6, %v520_v35, %v522_v30  ;;  %v2289_v45 = vsel %vm402_vm7, %v567_v36, %v569_v33  ;;  %v2292_v46 = vsel %vm402_vm7, %v566_v41, %v567_v36 }
 0x131   : > { %v611_v40 = vpop.permute.xlu1 %610  ;;  %v779_v37 = vpop.permute.xlu2 %778  ;;  %v729_v33 = vrot.slane %v723_v22, 2  ;;  %v2344_v35 = vsel %vm402_vm7, %v414_v29, %v415_v21  ;;  %v578_v22 = vrot.slane %v2272_v27, 2 }
 0x132   : > { %v609_v42 = vpop.permute.xlu0 %608  ;;  %v799_v50 = vsel %vm306_vm4, %v796_v47, %v779_v37  ;;  %v635_v58 = vsel %vm302_vm3, %v2126_v59, %v611_v40  ;;  %v2323_v59 = vsel %vm354_vm6, %v368_v57, %v370_v55 }
 0x133   : > { %v634_v6 = vsel %vm302_vm3, %v2133_v60, %v609_v42  ;;  %v417_v42 = vrot.slane %v2216_v39, 2  ;;  %v1876_v39 = vld [vmem:[%s3206_s0 + $0x21] ss:$0 sm:$0xff] }
 0x134   : > { %652 = vrot.lane.b32.xlu2 %v2250_v10, %s1986_s23 }
 0x139   : > { %v620_v51 = vpop.permute.xlu1 %619  ;;  %v788_v52 = vpop.permute.xlu2 %787 }
 0x13a   : > { %v2300_v53 = vsel %vm310_vm5, %v799_v50, %v788_v52  ;;  %v618_v54 = vpop.permute.xlu0 %617  ;;  %v638_v1 = vsel %vm306_vm4, %v635_v58, %v620_v51  ;;  %v418_v51 = vsel %vm402_vm7, %v415_v21, %v417_v42  ;;  %v534_v52 = vrot.slane %v2266_v23, 1  ;;  %v1875_v58 = vld [vmem:[%s3206_s0 + $0x1e] ss:$0 sm:$0xff]  ;;  %v2397_v21 = vld [vmem:[%s3206_s0 + $0x1] ss:$0 sm:$0xff] }
 0x13b   : > { %827 = vrot.lane.b32.xlu1 %v2300_v53, %s1985_s22  ;;  %v637_v13 = vsel %vm306_vm4, %v634_v6, %v618_v54  ;;  %v532_v54 = vrot.slane %v2272_v27, 1  ;;  %v886_v20 = vmul.f32 %v1876_v39, %v2300_v53 }
 0x141   : > { %v629_v4 = vpop.permute.xlu1 %628 }
 0x142   : > { %v2318_v11 = vsel %vm310_vm5, %v638_v1, %v629_v4  ;;  %v627_v12 = vpop.permute.xlu0 %626 }
 0x143   : > { %v678_v56 = vmul.f32 %v1871_v3, %v2318_v11  ;;  %v725_v14 = vmul.f32 %v1872_v2, %v2318_v11  ;;  %374 = vrot.lane.b32.xlu1 %v2323_v59, %s1986_s23  ;;  %v2331_v60 = vsel %vm310_vm5, %v637_v13, %v627_v12 }
 0x144   : > { %666 = vrot.lane.b32.xlu2 %v2331_v60, %s1985_s22  ;;  %654 = vrot.lane.b32.xlu0 %v2331_v60, %s1986_s23  ;;  %v677_v25 = vmul.f32 %v1871_v3, %v2331_v60  ;;  %v724_v26 = vmul.f32 %v1872_v2, %v2331_v60 }
 0x145   : > { %v685_v24 = vrot.slane %v678_v56, 1  ;;  %v732_v48 = vrot.slane %v725_v14, 2 }
 0x146   : > { %v683_v30 = vrot.slane %v677_v25, 1  ;;  %v730_v31 = vrot.slane %v724_v26, 2 }
 0x148   : > { %v2347_v36 = vsel %vm354_vm6, %v682_v49, %v683_v30  ;;  %v2350_v40 = vsel %vm354_vm6, %v683_v30, %v685_v24  ;;  %v2353_v37 = vsel %vm402_vm7, %v730_v31, %v732_v48  ;;  %v2358_v41 = vsel %vm402_vm7, %v729_v33, %v730_v31  ;;  %v1873_v30 = vld [vmem:[%s3206_s0] ss:$0 sm:$0xff] }
 0x149   : > { %v774_v32 = vpop.permute.xlu1 %773  ;;  %v577_v49 = vrot.slane %v2200_v28, 2 }
 0x14a   : > { %v772_v34 = vpop.permute.xlu0 %771  ;;  %v798_v55 = vsel %vm302_vm3, %v2159_v7, %v774_v32  ;;  %v2382_v7 = vsel %vm354_vm6, %v532_v54, %v534_v52  ;;  %v1877_v52 = vld [vmem:[%s3206_s0 + $0x2] ss:$0 sm:$0xff] }
 0x14b   : > { %419 = vrot.lane.b32.xlu1 %v2344_v35, %s1986_s23  ;;  %v797_v2 = vsel %vm302_vm3, %v2162_v8, %v772_v34  ;;  %v839_v8 = vmul.f32 %v1875_v58, %v2300_v53  ;;  %v892_v34 = vrot.slane %v886_v20, 2 }
 0x14c   : > { %815 = vrot.lane.b32.xlu2 %v2300_v53, %s1986_s23 }
 0x14d   : > { %v325_v24 = vpop.permute.xlu2 %324  ;;  %v845_v31 = vrot.slane %v839_v8, 1 }
 0x14e   : > { %v330_v42 = vmul.f32 %v2397_v21, %v325_v24 }
 0x151   : > { %v783_v47 = vpop.permute.xlu1 %782 }
 0x152   : > { %v781_v50 = vpop.permute.xlu0 %780  ;;  %v801_v3 = vsel %vm306_vm4, %v798_v55, %v783_v47  ;;  %v579_v47 = vsel %vm402_vm7, %v577_v49, %v578_v22 }
 0x153   : > { %433 = vrot.lane.b32.xlu1 %v418_v51, %s1985_s22  ;;  %v800_v12 = vsel %vm306_vm4, %v797_v2, %v781_v50  ;;  %v367_v50 = vrot.slane %v2186_v16, 1 }
 0x155   : > { %v369_v2 = vsel %vm354_vm6, %v367_v50, %v368_v57  ;;  %v695_v57 = vrot.slane %v2331_v60, 1 }
 0x159   : > { %v792_v1 = vpop.permute.xlu1 %791 }
 0x15a   : > { %v2379_v4 = vsel %vm310_vm5, %v801_v3, %v792_v1  ;;  %v790_v6 = vpop.permute.xlu0 %789  ;;  %v316_v1 = vmul.f32 %v1873_v30, %v2186_v16  ;;  %v697_v16 = vrot.slane %v2318_v11, 1 }
 0x15b   : > { %v841_v13 = vmul.f32 %v1875_v58, %v2379_v4  ;;  %v888_v56 = vmul.f32 %v1876_v39, %v2379_v4  ;;  %538 = vrot.lane.b32.xlu1 %v2382_v7, %s1986_s23  ;;  %v2390_v14 = vsel %vm310_vm5, %v800_v12, %v790_v6  ;;  %v580_v12 = vrot.slane %v2266_v23, 2 }
 0x15c   : > { %829 = vrot.lane.b32.xlu2 %v2390_v14, %s1985_s22  ;;  %817 = vrot.lane.b32.xlu0 %v2390_v14, %s1986_s23  ;;  %v840_v26 = vmul.f32 %v1875_v58, %v2390_v14  ;;  %v887_v29 = vmul.f32 %v1876_v39, %v2390_v14  ;;  %v698_v23 = vsel %vm354_vm6, %v695_v57, %v697_v16  ;;  %v860_v49 = vrot.slane %v2379_v4, 1 }
 0x15d   : > { %v848_v48 = vrot.slane %v841_v13, 1  ;;  %v895_v25 = vrot.slane %v888_v56, 2  ;;  %v332_v13 = vadd.f32 %v330_v42, %v316_v1  ;;  %v581_v20 = vsel %vm402_vm7, %v578_v22, %v580_v12 }
 0x15e   : > { %v846_v32 = vrot.slane %v840_v26, 1  ;;  %v893_v33 = vrot.slane %v887_v29, 2  ;;  %v694_v26 = vrot.slane %v2250_v10, 1  ;;  %v983_v29 = vsub.f32 0.0, %v2044_v18 }
 0x160   : > { %v2417_v55 = vsel %vm354_vm6, %v845_v31, %v846_v32  ;;  %v2420_v58 = vsel %vm354_vm6, %v846_v32, %v848_v48  ;;  %v2423_v39 = vsel %vm402_vm7, %v893_v33, %v895_v25  ;;  %v2426_v3 = vsel %vm402_vm7, %v892_v34, %v893_v33 }
 0x161   : > { %v531_v48 = vrot.slane %v2200_v28, 1  ;;  %v743_v25 = vrot.slane %v2318_v11, 2  ;;  %v858_v31 = vrot.slane %v2390_v14, 1  ;;  %v317_v33 = vmul.f32 %v1873_v30, %v2222_v43 }
 0x162   : > { %v986_v42 = vmul.f32 1.442695, %v983_v29  ;;  %v903_v43 = vrot.slane %v2300_v53, 2  ;;  %v857_v30 = vrot.slane %v2300_v53, 1 }
 0x163   : > { %582 = vrot.lane.b32.xlu1 %v579_v47, %s1986_s23  ;;  %v861_v18 = vsel %vm354_vm6, %v858_v31, %v860_v49 }
 0x164   : > { %384 = vrot.lane.b32.xlu2 %v369_v2, %s1985_s22  ;;  %372 = vrot.lane.b32.xlu0 %v369_v2, %s1986_s23  ;;  %1955 = vpow2.f32 %v986_v42  ;;  %v859_v12 = vsel %vm354_vm6, %v857_v30, %v858_v31 }
 0x165   : > { %v337_v6 = vpop.permute.xlu1 %336 }
 0x166   : > { %v342_v56 = vmul.f32 %v1877_v52, %v337_v6 }
 0x168   : > { %v344_v8 = vadd.f32 %v342_v56, %v332_v13  ;;  %v906_v13 = vrot.slane %v2379_v4, 2  ;;  %v982_v4 = vsub.f32 0.0, %v2041_v15 }
 0x16a   : > { %v2438_v24 = vadd.f32 %v2236_v62, %v344_v8  ;;  %v533_v62 = vsel %vm354_vm6, %v531_v48, %v532_v54 }
 0x16b   : > { %596 = vrot.lane.b32.xlu1 %v581_v20, %s1985_s22 }
 0x16c   : > { %421 = vrot.lane.b32.xlu2 %v418_v51, %s1986_s23  ;;  %386 = vrot.lane.b32.xlu0 %v2323_v59, %s1985_s22  ;;  %v741_v51 = vrot.slane %v2331_v60, 2  ;;  %v740_v59 = vrot.slane %v2250_v10, 2 }
 0x16e   : > { %v742_v22 = vsel %vm402_vm7, %v740_v59, %v741_v51  ;;  %v744_v54 = vsel %vm402_vm7, %v741_v51, %v743_v25  ;;  %v339_v11 = vpop.permute.xlu2 %338 }
 0x16f   : > { %v343_v50 = vmul.f32 %v1877_v52, %v339_v11  ;;  %v1956_v52 = vpop.eup %1955 }
 0x173   : > { %701 = vrot.lane.b32.xlu1 %v698_v23, %s1986_s23 }
 0x174   : > { %548 = vrot.lane.b32.xlu2 %v533_v62, %s1985_s22  ;;  %431 = vrot.lane.b32.xlu0 %v2344_v35, %s1985_s22  ;;  %v696_v35 = vsel %vm354_vm6, %v694_v26, %v695_v57  ;;  %v984_v57 = vmul.f32 1.442695, %v982_v4 }
 0x176   : > { %v2490_v8 = vpop.permute.xlu2 %489 }
 0x17b   : > { %745 = vrot.lane.b32.xlu1 %v742_v22, %s1986_s23 }
 0x17c   : > { %584 = vrot.lane.b32.xlu2 %v581_v20, %s1986_s23  ;;  %536 = vrot.lane.b32.xlu0 %v533_v62, %s1986_s23 }
 0x17d   : > { %v2492_v20 = vpop.permute.xlu1 %501 }
 0x183   : > { %759 = vrot.lane.b32.xlu1 %v744_v54, %s1985_s22 }
 0x184   : > { %711 = vrot.lane.b32.xlu2 %v696_v35, %s1985_s22  ;;  %550 = vrot.lane.b32.xlu0 %v2382_v7, %s1985_s22  ;;  %v904_v7 = vrot.slane %v2390_v14, 2 }
 0x186   : > { %v327_v32 = vpop.permute.xlu0 %326  ;;  %v504_v16 = vpop.permute.xlu2 %503 }
 0x187   : > { %v331_v34 = vmul.f32 %v2397_v21, %v327_v32  ;;  %v905_v21 = vsel %vm402_vm7, %v903_v43, %v904_v7  ;;  %v1884_v32 = vld [vmem:[%s3206_s0 + $0x4] ss:$0 sm:$0xff] }
 0x189   : > { %v333_v1 = vadd.f32 %v331_v34, %v317_v33  ;;  %v1886_v33 = vld [vmem:[%s3206_s0 + $0x5] ss:$0 sm:$0xff] }
 0x18b   : > { %864 = vrot.lane.b32.xlu1 %v861_v18, %s1986_s23  ;;  %v345_v2 = vadd.f32 %v343_v50, %v333_v1 }
 0x18c   : > { %747 = vrot.lane.b32.xlu2 %v744_v54, %s1986_s23  ;;  %594 = vrot.lane.b32.xlu0 %v579_v47, %s1985_s22  ;;  %v989_v47 = vadd.f32 1.0, %v1956_v52 }
 0x18d   : > { %v363_v6 = vadd.f32 %v2233_v61, %v345_v2  ;;  %v907_v61 = vsel %vm402_vm7, %v904_v7, %v906_v13  ;;  %v1885_v13 = vld [vmem:[%s3206_s0 + $0x7] ss:$0 sm:$0xff] }
 0x18e   : > { %1957 = vrcp.f32 %v989_v47 }
 0x18f   : > { %1959 = vpow2.f32 %v984_v57 }
 0x193   : > { %908 = vrot.lane.b32.xlu1 %v905_v21, %s1986_s23 }
 0x194   : > { %699 = vrot.lane.b32.xlu0 %v696_v35, %s1986_s23  ;;  %874 = vrot.lane.b32.xlu2 %v859_v12, %s1985_s22  ;;  %v1958_v56 = vpop.eup %1957 }
 0x195   : > { %v2497_v48 = vpop.permute.xlu1 %664  ;;  %v1960_v51 = vpop.eup %1959 }
 0x196   : > { %v988_v59 = vadd.f32 1.0, %v1960_v51 }
 0x198   : > { %1961 = vrcp.f32 %v988_v59 }
 0x19b   : > { %922 = vrot.lane.b32.xlu1 %v907_v61, %s1985_s22 }
 0x19c   : > { %713 = vrot.lane.b32.xlu0 %v698_v23, %s1985_s22  ;;  %910 = vrot.lane.b32.xlu2 %v907_v61, %s1986_s23  ;;  %v2500_v23 = vpop.permute.xlu2 %652  ;;  %v1887_v61 = vld [vmem:[%s3206_s0 + $0x8] ss:$0 sm:$0xff] }
 0x19e   : > { %v492_v15 = vpop.permute.xlu0 %491  ;;  %v1962_v54 = vpop.eup %1961 }
 0x1a3   : > { %996 = vrot.lane.b32.xlu1 %v1958_v56, %s1984_s21 }
 0x1a4   : > { %757 = vrot.lane.b32.xlu0 %v742_v22, %s1985_s22  ;;  %v2505_v25 = vpop.permute.xlu2 %666 }
 0x1ac   : > { %862 = vrot.lane.b32.xlu0 %v859_v12, %s1986_s23  ;;  %v2508_v26 = vpop.permute.xlu2 %815 }
 0x1ad   : > { %v2502_v62 = vpop.permute.xlu1 %827 }
 0x1b4   : > { %876 = vrot.lane.b32.xlu0 %v861_v18, %s1985_s22 }
 0x1b5   : > { %v375_v22 = vpop.permute.xlu1 %374 }
 0x1b6   : > { %v2511_v35 = vpop.permute.xlu0 %654  ;;  %v2513_v49 = vpop.permute.xlu2 %829  ;;  %v379_v7 = vmul.f32 %v1884_v32, %v375_v22 }
 0x1b8   : > { %v381_v52 = vadd.f32 %v379_v7, %v363_v6  ;;  %v1895_v6 = vld [vmem:[%s3206_s0 + $0x9] ss:$0 sm:$0xff] }
 0x1bc   : > { %920 = vrot.lane.b32.xlu0 %v905_v21, %s1985_s22 }
 0x1bd   : > { %v420_v29 = vpop.permute.xlu1 %419 }
 0x1be   : > { %v385_v34 = vpop.permute.xlu2 %384  ;;  %v425_v51 = vmul.f32 %v1885_v13, %v420_v29 }
 0x1bf   : > { %v390_v1 = vmul.f32 %v1886_v33, %v385_v34  ;;  %v482_v34 = vmul.f32 %v1895_v6, %v2272_v27 }
 0x1c4   : > { %994 = vrot.lane.b32.xlu0 %v1962_v54, %s1984_s21  ;;  %v1878_v54 = vld [vmem:[%s3206_s0 + $0xa] ss:$0 sm:$0xff] }
 0x1c5   : > { %v434_v11 = vpop.permute.xlu1 %433  ;;  %v496_v29 = vmul.f32 %v1878_v54, %v492_v15  ;;  %v1888_v15 = vld [vmem:[%s3206_s0 + $0xd] ss:$0 sm:$0xff] }
 0x1c6   : > { %v422_v47 = vpop.permute.xlu2 %421  ;;  %v438_v59 = vmul.f32 %v1887_v61, %v434_v11  ;;  %v481_v11 = vmul.f32 %v1895_v6, %v2200_v28  ;;  %v1889_v28 = vld [vmem:[%s3206_s0 + $0xe] ss:$0 sm:$0xff] }
 0x1c7   : > { %v426_v4 = vmul.f32 %v1885_v13, %v422_v47 }
 0x1cd   : > { %v539_v2 = vpop.permute.xlu1 %538 }
 0x1ce   : > { %v2515_v31 = vpop.permute.xlu0 %817 }
 0x1d5   : > { %v583_v57 = vpop.permute.xlu1 %582 }
 0x1d6   : > { %v373_v42 = vpop.permute.xlu0 %372 }
 0x1d7   : > { %v378_v50 = vmul.f32 %v1884_v32, %v373_v42 }
 0x1d9   : > { %v380_v18 = vadd.f32 %v378_v50, %v2438_v24 }
 0x1db   : > { %v392_v43 = vadd.f32 %v390_v1, %v380_v18  ;;  %v495_v18 = vmul.f32 %v1878_v54, %v2490_v8 }
 0x1dd   : > { %v410_v21 = vadd.f32 %v2242_v0, %v392_v43  ;;  %v597_v47 = vpop.permute.xlu1 %596 }
 0x1de   : > { %v387_v30 = vpop.permute.xlu0 %386 }
 0x1df   : > { %v391_v12 = vmul.f32 %v1886_v33, %v387_v30  ;;  %v427_v33 = vadd.f32 %v425_v51, %v410_v21  ;;  %v549_v21 = vpop.permute.xlu2 %548 }
 0x1e1   : > { %v393_v56 = vadd.f32 %v391_v12, %v381_v52 }
 0x1e3   : > { %v411_v24 = vadd.f32 %v2239_v63, %v393_v56  ;;  %v1879_v63 = vld [vmem:[%s3206_s0 + $0xb] ss:$0 sm:$0xff] }
 0x1e4   : > { %v508_v7 = vmul.f32 %v1879_v63, %v504_v16  ;;  %v507_v52 = vmul.f32 %v1879_v63, %v2492_v20  ;;  %v554_v20 = vmul.f32 %v1889_v28, %v549_v21 }
 0x1e5   : > { %v428_v0 = vadd.f32 %v426_v4, %v411_v24  ;;  %v543_v24 = vmul.f32 %v1888_v15, %v539_v2 }
 0x1e6   : > { %v432_v22 = vpop.permute.xlu0 %431 }
 0x1e7   : > { %v440_v32 = vadd.f32 %v438_v59, %v428_v0  ;;  %v437_v42 = vmul.f32 %v1887_v61, %v432_v22  ;;  %v1890_v0 = vld [vmem:[%s3206_s0 + $0x10] ss:$0 sm:$0xff] }
 0x1e9   : > { %v439_v50 = vadd.f32 %v437_v42, %v427_v33  ;;  %v484_v1 = vadd.f32 %v482_v34, %v440_v32  ;;  %v585_v32 = vpop.permute.xlu2 %584  ;;  %v702_v33 = vpop.permute.xlu1 %701  ;;  %v588_v42 = vmul.f32 %v1890_v0, %v583_v57 }
 0x1ea   : > { %v589_v34 = vmul.f32 %v1890_v0, %v585_v32 }
 0x1eb   : > { %v483_v43 = vadd.f32 %v481_v11, %v439_v50  ;;  %v498_v30 = vadd.f32 %v496_v29, %v484_v1  ;;  %v1900_v11 = vld [vmem:[%s3206_s0 + $0x12] ss:$0 sm:$0xff] }
 0x1ed   : > { %v497_v12 = vadd.f32 %v495_v18, %v483_v43  ;;  %v510_v27 = vadd.f32 %v508_v7, %v498_v30  ;;  %v645_v7 = vmul.f32 %v1900_v11, %v2331_v60  ;;  %v644_v30 = vmul.f32 %v1900_v11, %v2250_v10  ;;  %v1893_v10 = vld [vmem:[%s3206_s0 + $0x16] ss:$0 sm:$0xff] }
 0x1ee   : > { %v537_v13 = vpop.permute.xlu0 %536 }
 0x1ef   : > { %v509_v61 = vadd.f32 %v507_v52, %v497_v12  ;;  %v527_v8 = vadd.f32 %v2286_v38, %v510_v27  ;;  %v542_v56 = vmul.f32 %v1888_v15, %v537_v13 }
 0x1f1   : > { %v526_v16 = vadd.f32 %v2283_v44, %v509_v61  ;;  %v545_v6 = vadd.f32 %v543_v24, %v527_v8  ;;  %v1891_v44 = vld [vmem:[%s3206_s0 + $0x11] ss:$0 sm:$0xff]  ;;  %v746_v12 = vpop.permute.xlu1 %745  ;;  %v712_v8 = vpop.permute.xlu2 %711 }
 0x1f2   : > { %v601_v63 = vmul.f32 %v1891_v44, %v597_v47 }
 0x1f3   : > { %v544_v4 = vadd.f32 %v542_v56, %v526_v16 }
 0x1f5   : > { %v556_v51 = vadd.f32 %v554_v20, %v544_v4 }
 0x1f6   : > { %v551_v59 = vpop.permute.xlu0 %550 }
 0x1f7   : > { %v555_v22 = vmul.f32 %v1889_v28, %v551_v59  ;;  %v573_v54 = vadd.f32 %v2292_v46, %v556_v51  ;;  %v1880_v46 = vld [vmem:[%s3206_s0 + $0x13] ss:$0 sm:$0xff]  ;;  %v706_v51 = vmul.f32 %v1893_v10, %v702_v33 }
 0x1f8   : > { %v659_v57 = vmul.f32 %v1880_v46, %v2511_v35  ;;  %v658_v27 = vmul.f32 %v1880_v46, %v2500_v23  ;;  %v1892_v35 = vld [vmem:[%s3206_s0 + $0x17] ss:$0 sm:$0xff] }
 0x1f9   : > { %v557_v38 = vadd.f32 %v555_v22, %v545_v6  ;;  %v590_v18 = vadd.f32 %v588_v42, %v573_v54  ;;  %v760_v24 = vpop.permute.xlu1 %759  ;;  %v1894_v6 = vld [vmem:[%s3206_s0 + $0x19] ss:$0 sm:$0xff]  ;;  %v1972_v42 = vld [vmem:[%s2026_s17] sm:$0xff] }
 0x1fb   : > { %v574_v2 = vadd.f32 %v2289_v45, %v557_v38  ;;  %v1881_v45 = vld [vmem:[%s3206_s0 + $0x14] ss:$0 sm:$0xff]  ;;  %v1971_v38 = vld [vmem:[%s2026_s17 + $0x8] sm:$0xff] }
 0x1fc   : > { %v671_v47 = vmul.f32 %v1881_v45, %v2505_v25  ;;  %v670_v60 = vmul.f32 %v1881_v45, %v2497_v48  ;;  %v717_v48 = vmul.f32 %v1892_v35, %v712_v8 }
 0x1fd   : > { %v591_v29 = vadd.f32 %v589_v34, %v574_v2  ;;  %v931_v34 = vsub.f32 0.0, %v1971_v38 }
 0x1fe   : > { %v595_v50 = vpop.permute.xlu0 %594 }
 0x1ff   : > { %v603_v1 = vadd.f32 %v601_v63, %v591_v29  ;;  %v600_v43 = vmul.f32 %v1891_v44, %v595_v50  ;;  %v930_v63 = vsub.f32 0.0, %v1972_v42  ;;  %v751_v29 = vmul.f32 %v1894_v6, %v746_v12 }
 0x200   : > { %v934_v46 = vmul.f32 1.442695, %v931_v34 }
 0x201   : > { %v602_v52 = vadd.f32 %v600_v43, %v590_v18  ;;  %v647_v21 = vadd.f32 %v645_v7, %v603_v1  ;;  %v865_v1 = vpop.permute.xlu1 %864  ;;  %v1882_v7 = vld [vmem:[%s3206_s0 + $0x1c] ss:$0 sm:$0xff] }
 0x202   : > { %1963 = vpow2.f32 %v934_v46 }
 0x203   : > { %v646_v13 = vadd.f32 %v644_v30, %v602_v52  ;;  %v661_v15 = vadd.f32 %v659_v57, %v647_v21  ;;  %v932_v30 = vmul.f32 1.442695, %v930_v63  ;;  %v1883_v52 = vld [vmem:[%s3206_s0 + $0x1d] ss:$0 sm:$0xff]  ;;  %v822_v21 = vmul.f32 %v1882_v7, %v2515_v31  ;;  %v1899_v31 = vld [vmem:[%s3206_s0 + $0x1f] ss:$0 sm:$0xff] }
 0x205   : > { %v660_v28 = vadd.f32 %v658_v27, %v646_v13  ;;  %v673_v61 = vadd.f32 %v671_v47, %v661_v15  ;;  %v821_v13 = vmul.f32 %v1882_v7, %v2508_v26  ;;  %v834_v15 = vmul.f32 %v1883_v52, %v2513_v49 }
 0x206   : > { %v700_v16 = vpop.permute.xlu0 %699  ;;  %1965 = vpow2.f32 %v932_v30 }
 0x207   : > { %v672_v56 = vadd.f32 %v670_v60, %v660_v28  ;;  %v690_v23 = vadd.f32 %v2350_v40, %v673_v61  ;;  %v705_v20 = vmul.f32 %v1893_v10, %v700_v16  ;;  %v748_v40 = vpop.permute.xlu2 %747 }
 0x208   : > { %v752_v2 = vmul.f32 %v1894_v6, %v748_v40  ;;  %v1964_v10 = vpop.eup %1963  ;;  %v1898_v6 = vld [vmem:[%s3206_s0 + $0x22] ss:$0 sm:$0xff] }
 0x209   : > { %v689_v25 = vadd.f32 %v2347_v36, %v672_v56  ;;  %v708_v22 = vadd.f32 %v706_v51, %v690_v23  ;;  %v1897_v36 = vld [vmem:[%s3206_s0 + $0x1a] ss:$0 sm:$0xff]  ;;  %v909_v56 = vpop.permute.xlu1 %908 }
 0x20a   : > { %v764_v11 = vmul.f32 %v1897_v36, %v760_v24  ;;  %v869_v24 = vmul.f32 %v1899_v31, %v865_v1  ;;  %v914_v34 = vmul.f32 %v1898_v6, %v909_v56 }
 0x20b   : > { %v707_v4 = vadd.f32 %v705_v20, %v689_v25 }
 0x20c   : > { %v1966_v25 = vpop.eup %1965 }
 0x20d   : > { %v719_v59 = vadd.f32 %v717_v48, %v707_v4  ;;  %v937_v4 = vadd.f32 1.0, %v1964_v10 }
 0x20e   : > { %v714_v0 = vpop.permute.xlu0 %713 }
 0x20f   : > { %v718_v54 = vmul.f32 %v1892_v35, %v714_v0  ;;  %v736_v32 = vadd.f32 %v2358_v41, %v719_v59  ;;  %v1902_v41 = vld [vmem:[%s3206_s0 + $0x1b] ss:$0 sm:$0xff]  ;;  %v875_v16 = vpop.permute.xlu2 %874  ;;  %v936_v59 = vadd.f32 1.0, %v1966_v25  ;;  %1967 = vrcp.f32 %v937_v4 }
 0x210   : > { %v807_v12 = vmul.f32 %v1902_v41, %v2300_v53  ;;  %v1896_v53 = vld [vmem:[%s3206_s0 + $0x20] ss:$0 sm:$0xff] }
 0x211   : > { %v720_v44 = vadd.f32 %v718_v54, %v708_v22  ;;  %v753_v45 = vadd.f32 %v751_v29, %v736_v32  ;;  %v880_v20 = vmul.f32 %v1896_v53, %v875_v16  ;;  %1969 = vrcp.f32 %v936_v59 }
 0x213   : > { %v737_v33 = vadd.f32 %v2353_v37, %v720_v44  ;;  %v808_v37 = vmul.f32 %v1902_v41, %v2390_v14  ;;  %v833_v14 = vmul.f32 %v1883_v52, %v2502_v62 }
 0x215   : > { %v754_v50 = vadd.f32 %v752_v2, %v737_v33  ;;  %v1968_v42 = vpop.eup %1967 }
 0x216   : > { %v758_v18 = vpop.permute.xlu0 %757 }
 0x217   : > { %v766_v43 = vadd.f32 %v764_v11, %v754_v50  ;;  %v763_v57 = vmul.f32 %v1897_v36, %v758_v18  ;;  %v911_v32 = vpop.permute.xlu2 %910  ;;  %v923_v36 = vpop.permute.xlu1 %922 }
 0x218   : > { %v915_v44 = vmul.f32 %v1898_v6, %v911_v32  ;;  %v1970_v50 = vpop.eup %1969 }
 0x219   : > { %v765_v27 = vadd.f32 %v763_v57, %v753_v45  ;;  %v810_v47 = vadd.f32 %v808_v37, %v766_v43 }
 0x21b   : > { %v809_v60 = vadd.f32 %v807_v12, %v765_v27  ;;  %v824_v28 = vadd.f32 %v822_v21, %v810_v47 }
 0x21d   : > { %v823_v61 = vadd.f32 %v821_v13, %v809_v60  ;;  %v836_v8 = vadd.f32 %v834_v15, %v824_v28 }
 0x21e   : > { %v863_v35 = vpop.permute.xlu0 %862 }
 0x21f   : > { %v835_v26 = vadd.f32 %v833_v14, %v823_v61  ;;  %v853_v49 = vadd.f32 %v2420_v58, %v836_v8  ;;  %v868_v62 = vmul.f32 %v1899_v31, %v863_v35  ;;  %v997_v45 = vpop.permute.xlu1 %996 }
 0x221   : > { %v852_v23 = vadd.f32 %v2417_v55, %v835_v26  ;;  %v871_v22 = vadd.f32 %v869_v24, %v853_v49  ;;  %v1901_v55 = vld [vmem:[%s3206_s0 + $0x23] ss:$0 sm:$0xff] }
 0x222   : > { %v927_v2 = vmul.f32 %v1901_v55, %v923_v36 }
 0x223   : > { %v870_v48 = vadd.f32 %v868_v62, %v852_v23 }
 0x225   : > { %v882_v51 = vadd.f32 %v880_v20, %v870_v48 }
 0x226   : > { %v877_v0 = vpop.permute.xlu0 %876 }
 0x227   : > { %v881_v54 = vmul.f32 %v1896_v53, %v877_v0  ;;  %v899_v58 = vadd.f32 %v2426_v3, %v882_v51 }
 0x229   : > { %v883_v40 = vadd.f32 %v881_v54, %v871_v22  ;;  %v916_v29 = vadd.f32 %v914_v34, %v899_v58 }
 0x22b   : > { %v900_v38 = vadd.f32 %v2423_v39, %v883_v40 }
 0x22d   : > { %v917_v33 = vadd.f32 %v915_v44, %v900_v38 }
 0x22e   : > { %v921_v63 = vpop.permute.xlu0 %920 }
 0x22f   : > { %v926_v11 = vmul.f32 %v1901_v55, %v921_v63  ;;  %v929_v3 = vadd.f32 %v927_v2, %v917_v33  ;;  %v1903_v63 = vld [vmem:[%s3207_s1 + $0x3] ss:$0 sm:$0xff] }
 0x231   : > { %v928_v41 = vadd.f32 %v926_v11, %v916_v29  ;;  %v941_v46 = vmul.f32 %v1968_v42, %v929_v3  ;;  %v981_v7 = vmul.f32 %v2168_v9, %v929_v3  ;;  %v961_v43 = vmul.f32 %v2194_v19, %v929_v3  ;;  %v1904_v11 = vld [vmem:[%s3207_s1 + $0x6] ss:$0 sm:$0xff] }
 0x232   : > { %v1001_v57 = vmul.f32 %v997_v45, %v929_v3 }
 0x233   : > { %1006 = vrot.lane.b32.xlu0 %v941_v46, %s1981_s18  ;;  %v960_v1 = vmul.f32 %v2150_v5, %v928_v41  ;;  %v940_v18 = vmul.f32 %v1970_v50, %v928_v41  ;;  %v980_v39 = vmul.f32 %v2192_v17, %v928_v41 }
 0x235   : > { %1026 = vrot.lane.b32.xlu1 %v960_v1, %s1987_s16  ;;  %1004 = vrot.lane.b32.xlu2 %v940_v18, %s1981_s18  ;;  %s1990_s18 = smov 124  }
 0x236   : > { %v995_v37 = vpop.permute.xlu0 %994 }
 0x237   : > { %v1000_v30 = vmul.f32 %v995_v37, %v928_v41 }
 0x23b   : > { %1048 = vrot.lane.b32.xlu0 %v980_v39, %s1988_s24 }
 0x23d   : > { %1050 = vrot.lane.b32.xlu1 %v981_v7, %s1988_s24  ;;  %1028 = vrot.lane.b32.xlu2 %v961_v43, %s1987_s16 }
 0x243   : > { %1072 = vrot.lane.b32.xlu0 %v1001_v57, %s1989_s25 }
 0x245   : > { %1070 = vrot.lane.b32.xlu2 %v1000_v30, %s1989_s25 }
 0x28f   : > { %v1005_v5 = vpop.permute.xlu2 %1004 }
 0x290   : > { %v1010_v52 = vsel %vm190_vm0, 0.0, %v1005_v5 }
 0x291   : > { %v1012_v17 = vsel %vm193_vm1, %v1010_v52, 0.0 }
 0x292   : > { %v1016_v21 = vrot.slane %v1012_v17, 7 }
 0x294   : > { %v2634_v12 = vsel %vm198_vm2, 0.0, %v1016_v21 }
 0x295   : > { %1092 = vrot.lane.b32.xlu1 %v2634_v12, %s1982_s19 }
 0x297   : > { %v1029_v16 = vpop.permute.xlu2 %1028 }
 0x298   : > { %v1033_v53 = vsel %vm190_vm0, 0.0, %v1029_v16 }
 0x299   : > { %v1035_v26 = vsel %vm193_vm1, %v1033_v53, 0.0 }
 0x29a   : > { %v1039_v10 = vrot.slane %v1035_v26, 7 }
 0x29c   : > { %v2679_v25 = vsel %vm198_vm2, %v1039_v10, 0.0 }
 0x29d   : > { %1101 = vrot.lane.b32.xlu1 %v2634_v12, %s1983_s20 }
 0x29f   : > { %v1071_v59 = vpop.permute.xlu2 %1070 }
 0x2a0   : > { %v1076_v0 = vsel %vm190_vm0, 0.0, %v1071_v59 }
 0x2a1   : > { %v1078_v22 = vsel %vm193_vm1, %v1076_v0, 0.0 }
 0x2a2   : > { %v1082_v58 = vrot.slane %v1078_v22, 7 }
 0x2a4   : > { %v2720_v55 = vsel %vm198_vm2, 0.0, %v1082_v58 }
 0x2a5   : > { %v1007_v9 = vpop.permute.xlu0 %1006  ;;  %1110 = vrot.lane.b32.xlu1 %v2634_v12, %s1984_s21 }
 0x2a6   : > { %v1011_v19 = vsel %vm190_vm0, 0.0, %v1007_v9 }
 0x2a7   : > { %v1013_v27 = vsel %vm193_vm1, %v1011_v19, 0.0  ;;  %v1027_v47 = vpop.permute.xlu1 %1026 }
 0x2a8   : > { %v1017_v13 = vrot.slane %v1013_v27, 7  ;;  %v1032_v15 = vsel %vm190_vm0, 0.0, %v1027_v47 }
 0x2a9   : > { %v1034_v60 = vsel %vm193_vm1, %v1032_v15, 0.0 }
 0x2aa   : > { %v1038_v28 = vrot.slane %v1034_v60, 7  ;;  %v2647_v14 = vsel %vm198_vm2, %v1017_v13, 0.0  ;;  %v2650_v61 = vsel %vm198_vm2, %v1016_v21, %v1017_v13 }
 0x2ab   : > { %1096 = vrot.lane.b32.xlu0 %v2647_v14, %s1982_s19  ;;  %1094 = vrot.lane.b32.xlu2 %v2650_v61, %s1982_s19 }
 0x2ac   : > { %v2657_v8 = vsel %vm198_vm2, 0.0, %v1038_v28  ;;  %v2682_v20 = vsel %vm198_vm2, %v1038_v28, %v1039_v10 }
 0x2ad   : > { %1255 = vrot.lane.b32.xlu1 %v2657_v8, %s1982_s19  ;;  %v1049_v35 = vpop.permute.xlu0 %1048 }
 0x2ae   : > { %v1054_v31 = vsel %vm190_vm0, 0.0, %v1049_v35 }
 0x2af   : > { %v1056_v49 = vsel %vm193_vm1, %v1054_v31, 0.0  ;;  %v1051_v56 = vpop.permute.xlu1 %1050 }
 0x2b0   : > { %v1060_v23 = vrot.slane %v1056_v49, 7  ;;  %v1055_v62 = vsel %vm190_vm0, 0.0, %v1051_v56 }
 0x2b1   : > { %v1057_v4 = vsel %vm193_vm1, %v1055_v62, 0.0 }
 0x2b2   : > { %v2689_v48 = vsel %vm198_vm2, 0.0, %v1060_v23  ;;  %v1061_v24 = vrot.slane %v1057_v4, 7 }
 0x2b3   : > { %1105 = vrot.lane.b32.xlu0 %v2647_v14, %s1983_s20  ;;  %1103 = vrot.lane.b32.xlu2 %v2650_v61, %s1983_s20 }
 0x2b4   : > { %v2699_v51 = vsel %vm198_vm2, %v1060_v23, %v1061_v24  ;;  %v2709_v6 = vsel %vm198_vm2, %v1061_v24, 0.0 }
 0x2b5   : > { %1264 = vrot.lane.b32.xlu1 %v2657_v8, %s1983_s20  ;;  %v1073_v54 = vpop.permute.xlu0 %1072 }
 0x2b6   : > { %v1077_v32 = vsel %vm190_vm0, 0.0, %v1073_v54 }
 0x2b7   : > { %v1079_v40 = vsel %vm193_vm1, %v1077_v32, 0.0 }
 0x2b8   : > { %v1083_v36 = vrot.slane %v1079_v40, 7 }
 0x2ba   : > { %v2730_v44 = vsel %vm198_vm2, %v1082_v58, %v1083_v36  ;;  %v2739_v38 = vsel %vm198_vm2, %v1083_v36, 0.0 }
 0x2bb   : > { %1114 = vrot.lane.b32.xlu0 %v2647_v14, %s1984_s21  ;;  %1112 = vrot.lane.b32.xlu2 %v2650_v61, %s1984_s21 }
 0x2bd   : > { %1273 = vrot.lane.b32.xlu1 %v2657_v8, %s1984_s21 }
 0x2c3   : > { %1259 = vrot.lane.b32.xlu0 %v2679_v25, %s1982_s19  ;;  %1257 = vrot.lane.b32.xlu2 %v2682_v20, %s1982_s19 }
 0x2c5   : > { %1427 = vrot.lane.b32.xlu1 %v2689_v48, %s1983_s20 }
 0x2cb   : > { %1268 = vrot.lane.b32.xlu0 %v2679_v25, %s1983_s20  ;;  %1266 = vrot.lane.b32.xlu2 %v2682_v20, %s1983_s20 }
 0x2cd   : > { %1438 = vrot.lane.b32.xlu1 %v2699_v51, %s1984_s21 }
 0x2d3   : > { %1277 = vrot.lane.b32.xlu0 %v2679_v25, %s1984_s21  ;;  %1275 = vrot.lane.b32.xlu2 %v2682_v20, %s1984_s21 }
 0x2d5   : > { %1440 = vrot.lane.b32.xlu1 %v2709_v6, %s1984_s21 }
 0x2db   : > { %1420 = vrot.lane.b32.xlu0 %v2699_v51, %s1982_s19  ;;  %1418 = vrot.lane.b32.xlu2 %v2689_v48, %s1982_s19 }
 0x2dd   : > { %1590 = vrot.lane.b32.xlu1 %v2720_v55, %s1983_s20 }
 0x2e3   : > { %1436 = vrot.lane.b32.xlu0 %v2689_v48, %s1984_s21  ;;  %1429 = vrot.lane.b32.xlu2 %v2699_v51, %s1983_s20 }
 0x2e5   : > { %1601 = vrot.lane.b32.xlu1 %v2730_v44, %s1984_s21 }
 0x2eb   : > { %1431 = vrot.lane.b32.xlu0 %v2709_v6, %s1983_s20  ;;  %1422 = vrot.lane.b32.xlu2 %v2709_v6, %s1982_s19 }
 0x2ed   : > { %1603 = vrot.lane.b32.xlu1 %v2739_v38, %s1984_s21 }
 0x2f3   : > { %1581 = vrot.lane.b32.xlu2 %v2720_v55, %s1982_s19  ;;  %1583 = vrot.lane.b32.xlu0 %v2730_v44, %s1982_s19 }
 0x2fb   : > { %1592 = vrot.lane.b32.xlu2 %v2730_v44, %s1983_s20  ;;  %1599 = vrot.lane.b32.xlu0 %v2720_v55, %s1984_s21 }
 0x303   : > { %1585 = vrot.lane.b32.xlu2 %v2739_v38, %s1982_s19  ;;  %1594 = vrot.lane.b32.xlu0 %v2739_v38, %s1983_s20  ;;  %s170_s20 = scalar_lea.vmem %s3209_s3, %s1847_s27 }
 0x305   : > { %v1095_v34 = vpop.permute.xlu2 %1094 }
 0x306   : > { %v1120_v29 = vsel %vm302_vm3, %v2650_v61, %v1095_v34 }
 0x307   : > { %v1093_v2 = vpop.permute.xlu1 %1092 }
 0x308   : > { %v1119_v41 = vsel %vm302_vm3, %v2634_v12, %v1093_v2 }
 0x30d   : > { %v1104_v33 = vpop.permute.xlu2 %1103 }
 0x30e   : > { %v1123_v3 = vsel %vm306_vm4, %v1120_v29, %v1104_v33 }
 0x30f   : > { %v1102_v42 = vpop.permute.xlu1 %1101 }
 0x310   : > { %v1122_v1 = vsel %vm306_vm4, %v1119_v41, %v1102_v42 }
 0x315   : > { %v1113_v50 = vpop.permute.xlu2 %1112 }
 0x316   : > { %v2767_v46 = vsel %vm310_vm5, %v1123_v3, %v1113_v50 }
 0x317   : > { %v1111_v18 = vpop.permute.xlu1 %1110  ;;  %1140 = vrot.lane.b32.xlu2 %v2767_v46, %s1986_s23  ;;  %v1163_v39 = vmul.f32 %v1903_v63, %v2767_v46  ;;  %v1181_v43 = vrot.slane %v2767_v46, 1  ;;  %v1210_v45 = vmul.f32 %v1904_v11, %v2767_v46  ;;  %v1227_v30 = vrot.slane %v2767_v46, 2 }
 0x318   : > { %v2774_v7 = vsel %vm310_vm5, %v1122_v1, %v1111_v18 }
 0x319   : > { %1138 = vrot.lane.b32.xlu1 %v2774_v7, %s1986_s23  ;;  %1150 = vrot.lane.b32.xlu0 %v2774_v7, %s1985_s22  ;;  %v1180_v37 = vrot.slane %v2774_v7, 1  ;;  %v1226_v57 = vrot.slane %v2774_v7, 2  ;;  %v1162_v5 = vmul.f32 %v1903_v63, %v2774_v7  ;;  %v1209_v52 = vmul.f32 %v1904_v11, %v2774_v7 }
 0x31a   : > { %v1169_v9 = vrot.slane %v1163_v39, 1  ;;  %v1216_v27 = vrot.slane %v1210_v45, 2 }
 0x31b   : > { %v2788_v17 = vsel %vm354_vm6, %v1180_v37, %v1181_v43  ;;  %v2791_v21 = vsel %vm402_vm7, %v1226_v57, %v1227_v30  ;;  %v1168_v12 = vrot.slane %v1162_v5, 1  ;;  %v1215_v19 = vrot.slane %v1209_v52, 2 }
 0x31d   : > { %v1097_v47 = vpop.permute.xlu0 %1096  ;;  %v1258_v13 = vpop.permute.xlu2 %1257  ;;  %v2794_v15 = vsel %vm354_vm6, %v1168_v12, %v1169_v9  ;;  %v2797_v60 = vsel %vm402_vm7, %v1215_v19, %v1216_v27 }
 0x31e   : > { %v1121_v61 = vsel %vm302_vm3, %v2647_v14, %v1097_v47  ;;  %v1283_v26 = vsel %vm302_vm3, %v2682_v20, %v1258_v13  ;;  %v1906_v20 = vld [vmem:[%s3207_s1 + $0xf] ss:$0 sm:$0xff] }
 0x31f   : > { %v1256_v28 = vpop.permute.xlu1 %1255 }
 0x320   : > { %v1282_v49 = vsel %vm302_vm3, %v2657_v8, %v1256_v28  ;;  %v1905_v8 = vld [vmem:[%s3207_s1 + $0xc] ss:$0 sm:$0xff] }
 0x321   : > { %1152 = vrot.lane.b32.xlu1 %v2767_v46, %s1985_s22 }
 0x325   : > { %v1106_v16 = vpop.permute.xlu0 %1105  ;;  %v1267_v35 = vpop.permute.xlu2 %1266 }
 0x326   : > { %v1124_v53 = vsel %vm306_vm4, %v1121_v61, %v1106_v16  ;;  %v1286_v10 = vsel %vm306_vm4, %v1283_v26, %v1267_v35 }
 0x327   : > { %v1265_v31 = vpop.permute.xlu1 %1264 }
 0x328   : > { %v1285_v62 = vsel %vm306_vm4, %v1282_v49, %v1265_v31 }
 0x32d   : > { %v1115_v56 = vpop.permute.xlu0 %1114  ;;  %v1276_v23 = vpop.permute.xlu2 %1275 }
 0x32e   : > { %v1127_v4 = vsel %vm310_vm5, %v1124_v53, %v1115_v56  ;;  %v2812_v14 = vsel %vm310_vm5, %v1286_v10, %v1276_v23 }
 0x32f   : > { %v1164_v24 = vmul.f32 %v1903_v63, %v1127_v4  ;;  %v1183_v59 = vrot.slane %v1127_v4, 1  ;;  %v1211_v0 = vmul.f32 %v1904_v11, %v1127_v4  ;;  %v1229_v22 = vrot.slane %v1127_v4, 2  ;;  %v1274_v54 = vpop.permute.xlu1 %1273  ;;  %1303 = vrot.lane.b32.xlu2 %v2812_v14, %s1986_s23 }
 0x330   : > { %v2823_v58 = vsel %vm310_vm5, %v1285_v62, %v1274_v54  ;;  %v1344_v32 = vrot.slane %v2812_v14, 1  ;;  %v1390_v42 = vrot.slane %v2812_v14, 2  ;;  %v1326_v50 = vmul.f32 %v1905_v8, %v2812_v14 }
 0x331   : > { %v1171_v40 = vrot.slane %v1164_v24, 1  ;;  %v1218_v36 = vrot.slane %v1211_v0, 2  ;;  %1313 = vrot.lane.b32.xlu0 %v2823_v58, %s1985_s22  ;;  %1301 = vrot.lane.b32.xlu1 %v2823_v58, %s1986_s23  ;;  %v2831_v34 = vsel %vm354_vm6, %v1181_v43, %v1183_v59  ;;  %v2834_v2 = vsel %vm402_vm7, %v1227_v30, %v1229_v22  ;;  %v1907_v22 = vld [vmem:[%s3207_s1 + $0x15] ss:$0 sm:$0xff] }
 0x332   : > { %v1343_v33 = vrot.slane %v2823_v58, 1  ;;  %v1389_v63 = vrot.slane %v2823_v58, 2  ;;  %v1325_v29 = vmul.f32 %v1905_v8, %v2823_v58  ;;  %v1373_v41 = vmul.f32 %v1906_v20, %v2812_v14 }
 0x333   : > { %v2841_v11 = vsel %vm354_vm6, %v1169_v9, %v1171_v40  ;;  %v2844_v3 = vsel %vm402_vm7, %v1216_v27, %v1218_v36  ;;  %v1372_v43 = vmul.f32 %v1906_v20, %v2823_v58  ;;  %v1332_v37 = vrot.slane %v1326_v50, 1 }
 0x334   : > { %v2849_v1 = vsel %vm354_vm6, %v1343_v33, %v1344_v32  ;;  %v2852_v18 = vsel %vm402_vm7, %v1389_v63, %v1390_v42  ;;  %v1331_v39 = vrot.slane %v1325_v29, 1  ;;  %v1379_v57 = vrot.slane %v1373_v41, 2 }
 0x335   : > { %v1260_v45 = vpop.permute.xlu0 %1259  ;;  %v1378_v30 = vrot.slane %v1372_v43, 2  ;;  %v1419_v19 = vpop.permute.xlu2 %1418 }
 0x336   : > { %v2856_v5 = vsel %vm354_vm6, %v1331_v39, %v1332_v37  ;;  %v1284_v12 = vsel %vm302_vm3, %v2679_v25, %v1260_v45  ;;  %v1445_v54 = vsel %vm302_vm3, %v2689_v48, %v1419_v19 }
 0x337   : > { %v2859_v52 = vsel %vm402_vm7, %v1378_v30, %v1379_v57  ;;  %v1428_v47 = vpop.permute.xlu1 %1427 }
 0x339   : > { %1315 = vrot.lane.b32.xlu1 %v2812_v14, %s1985_s22 }
 0x33d   : > { %v1269_v9 = vpop.permute.xlu0 %1268  ;;  %v1430_v31 = vpop.permute.xlu2 %1429 }
 0x33e   : > { %v1287_v27 = vsel %vm306_vm4, %v1284_v12, %v1269_v9 }
 0x33f   : > { %v1439_v26 = vpop.permute.xlu1 %1438 }
 0x345   : > { %v1278_v13 = vpop.permute.xlu0 %1277 }
 0x346   : > { %v1290_v28 = vsel %vm310_vm5, %v1287_v27, %v1278_v13 }
 0x347   : > { %v1327_v61 = vmul.f32 %v1905_v8, %v1290_v28  ;;  %v1346_v16 = vrot.slane %v1290_v28, 1  ;;  %v1374_v35 = vmul.f32 %v1906_v20, %v1290_v28  ;;  %v1392_v53 = vrot.slane %v1290_v28, 2  ;;  %v1423_v8 = vpop.permute.xlu2 %1422  ;;  %v1441_v20 = vpop.permute.xlu1 %1440 }
 0x348   : > { %v1447_v9 = vsel %vm302_vm3, %v2709_v6, %v1423_v8 }
 0x349   : > { %v1334_v49 = vrot.slane %v1327_v61, 1  ;;  %v1381_v10 = vrot.slane %v1374_v35, 2  ;;  %v2868_v56 = vsel %vm354_vm6, %v1344_v32, %v1346_v16  ;;  %v2871_v25 = vsel %vm402_vm7, %v1390_v42, %v1392_v53 }
 0x34a   : > { %v1448_v32 = vsel %vm306_vm4, %v1445_v54, %v1428_v47 }
 0x34b   : > { %v2874_v23 = vsel %vm354_vm6, %v1332_v37, %v1334_v49  ;;  %v2877_v62 = vsel %vm402_vm7, %v1379_v57, %v1381_v10 }
 0x34d   : > { %v1421_v4 = vpop.permute.xlu0 %1420 }
 0x34e   : > { %v1446_v24 = vsel %vm302_vm3, %v2699_v51, %v1421_v4  ;;  %v1908_v51 = vld [vmem:[%s3207_s1 + $0x18] ss:$0 sm:$0xff] }
 0x34f   : > { %v1449_v59 = vsel %vm306_vm4, %v1446_v24, %v1430_v31  ;;  %v1582_v30 = vpop.permute.xlu2 %1581  ;;  %v1591_v19 = vpop.permute.xlu1 %1590 }
 0x350   : > { %v2883_v0 = vsel %vm310_vm5, %v1449_v59, %v1439_v26 }
 0x351   : > { %1466 = vrot.lane.b32.xlu2 %v2883_v0, %s1986_s23  ;;  %v1489_v36 = vmul.f32 %v1907_v22, %v2883_v0  ;;  %v1536_v42 = vmul.f32 %v1908_v51, %v2883_v0  ;;  %v1553_v48 = vrot.slane %v2883_v0, 2  ;;  %v1507_v28 = vrot.slane %v2883_v0, 1 }
 0x353   : > { %v1495_v43 = vrot.slane %v1489_v36, 1  ;;  %v1542_v37 = vrot.slane %v1536_v42, 2 }
 0x355   : > { %v1437_v40 = vpop.permute.xlu0 %1436 }
 0x356   : > { %v2898_v33 = vsel %vm310_vm5, %v1448_v32, %v1437_v40  ;;  %v1608_v32 = vsel %vm302_vm3, %v2720_v55, %v1582_v30 }
 0x357   : > { %1476 = vrot.lane.b32.xlu0 %v2898_v33, %s1985_s22  ;;  %1464 = vrot.lane.b32.xlu1 %v2898_v33, %s1986_s23  ;;  %v1552_v63 = vrot.slane %v2898_v33, 2  ;;  %v1488_v29 = vmul.f32 %v1907_v22, %v2898_v33  ;;  %v1535_v50 = vmul.f32 %v1908_v51, %v2898_v33  ;;  %v1593_v59 = vpop.permute.xlu2 %1592  ;;  %v1602_v54 = vpop.permute.xlu1 %1601  ;;  %v1611_v40 = vsel %vm306_vm4, %v1608_v32, %v1591_v19 }
 0x359   : > { %v2910_v41 = vsel %vm402_vm7, %v1552_v63, %v1553_v48  ;;  %v1494_v39 = vrot.slane %v1488_v29, 1  ;;  %v1541_v45 = vrot.slane %v1535_v50, 2 }
 0x35b   : > { %v2913_v57 = vsel %vm354_vm6, %v1494_v39, %v1495_v43  ;;  %v2916_v12 = vsel %vm402_vm7, %v1541_v45, %v1542_v37 }
 0x35d   : > { %v1432_v27 = vpop.permute.xlu0 %1431 }
 0x35e   : > { %v1450_v47 = vsel %vm306_vm4, %v1447_v9, %v1432_v27 }
 0x35f   : > { %v1453_v13 = vsel %vm310_vm5, %v1450_v47, %v1441_v20  ;;  %1478 = vrot.lane.b32.xlu1 %v2883_v0, %s1985_s22  ;;  %v1911_v20 = vld [vmem:[%s3207_s1 + $0x1e] ss:$0 sm:$0xff]  ;;  %v1586_v30 = vpop.permute.xlu2 %1585 }
 0x360   : > { %v1490_v61 = vmul.f32 %v1907_v22, %v1453_v13  ;;  %v1537_v16 = vmul.f32 %v1908_v51, %v1453_v13  ;;  %v1555_v35 = vrot.slane %v1453_v13, 2  ;;  %v1509_v53 = vrot.slane %v1453_v13, 1 }
 0x361   : > { %v1610_v13 = vsel %vm302_vm3, %v2739_v38, %v1586_v30 }
 0x362   : > { %v1497_v31 = vrot.slane %v1490_v61, 1  ;;  %v1544_v26 = vrot.slane %v1537_v16, 2  ;;  %v2926_v49 = vsel %vm402_vm7, %v1553_v48, %v1555_v35  ;;  %v2931_v6 = vsel %vm354_vm6, %v1507_v28, %v1509_v53  ;;  %v1604_v16 = vpop.permute.xlu1 %1603 }
 0x364   : > { %v2934_v10 = vsel %vm354_vm6, %v1495_v43, %v1497_v31  ;;  %v2937_v4 = vsel %vm402_vm7, %v1542_v37, %v1544_v26 }
 0x365   : > { %v1584_v24 = vpop.permute.xlu0 %1583 }
 0x366   : > { %v1609_v22 = vsel %vm302_vm3, %v2730_v44, %v1584_v24  ;;  %v1912_v44 = vld [vmem:[%s3207_s1 + $0x21] ss:$0 sm:$0xff] }
 0x367   : > { %v1612_v8 = vsel %vm306_vm4, %v1609_v22, %v1593_v59 }
 0x368   : > { %v2943_v51 = vsel %vm310_vm5, %v1612_v8, %v1602_v54 }
 0x369   : > { %1629 = vrot.lane.b32.xlu2 %v2943_v51, %s1986_s23  ;;  %v1652_v42 = vmul.f32 %v1911_v20, %v2943_v51  ;;  %v1699_v63 = vmul.f32 %v1912_v44, %v2943_v51  ;;  %v1716_v55 = vrot.slane %v2943_v51, 2 }
 0x36b   : > { %v1658_v37 = vrot.slane %v1652_v42, 1  ;;  %v1705_v19 = vrot.slane %v1699_v63, 2  ;;  %v1506_v63 = vrot.slane %v2898_v33, 1 }
 0x36d   : > { %v1600_v36 = vpop.permute.xlu0 %1599 }
 0x36e   : > { %v2958_v48 = vsel %vm310_vm5, %v1611_v40, %v1600_v36 }
 0x36f   : > { %1639 = vrot.lane.b32.xlu0 %v2958_v48, %s1985_s22  ;;  %1627 = vrot.lane.b32.xlu1 %v2958_v48, %s1986_s23  ;;  %v1715_v29 = vrot.slane %v2958_v48, 2  ;;  %v1651_v50 = vmul.f32 %v1911_v20, %v2958_v48  ;;  %v1698_v39 = vmul.f32 %v1912_v44, %v2958_v48 }
 0x371   : > { %1185 = vrot.lane.b32.xlu2 %v2788_v17, %s1986_s23  ;;  %v2974_v43 = vsel %vm402_vm7, %v1715_v29, %v1716_v55  ;;  %v1657_v45 = vrot.slane %v1651_v50, 1  ;;  %v1704_v9 = vrot.slane %v1698_v39, 2  ;;  %v1141_v32 = vpop.permute.xlu2 %1140 }
 0x373   : > { %v2977_v27 = vsel %vm354_vm6, %v1657_v45, %v1658_v37  ;;  %v2980_v47 = vsel %vm402_vm7, %v1704_v9, %v1705_v19 }
 0x375   : > { %v1595_v61 = vpop.permute.xlu0 %1594 }
 0x376   : > { %v1613_v35 = vsel %vm306_vm4, %v1610_v13, %v1595_v61 }
 0x377   : > { %v2986_v53 = vsel %vm310_vm5, %v1613_v35, %v1604_v16  ;;  %1187 = vrot.lane.b32.xlu0 %v2831_v34, %s1986_s23  ;;  %1197 = vrot.lane.b32.xlu1 %v2788_v17, %s1985_s22  ;;  %v1909_v17 = vld [vmem:[%s3207_s1] ss:$0 sm:$0xff] }
 0x378   : > { %v1653_v31 = vmul.f32 %v1911_v20, %v2986_v53  ;;  %v1700_v26 = vmul.f32 %v1912_v44, %v2986_v53  ;;  %v1130_v8 = vmul.f32 %v1909_v17, %v2774_v7  ;;  %v1131_v42 = vmul.f32 %v1909_v17, %v2767_v46  ;;  %v1920_v17 = vld [vmem:[%s3207_s1 + $0x5] ss:$0 sm:$0xff] }
 0x379   : > { %1199 = vrot.lane.b32.xlu2 %v2831_v34, %s1985_s22  ;;  %v1910_v34 = vld [vmem:[%s3207_s1 + $0x1] ss:$0 sm:$0xff]  ;;  %v1669_v46 = vrot.slane %v2958_v48, 1 }
 0x37a   : > { %v1660_v38 = vrot.slane %v1653_v31, 1  ;;  %v1707_v24 = vrot.slane %v1700_v26, 2  ;;  %v1145_v40 = vmul.f32 %v1910_v34, %v1141_v32 }
 0x37c   : > { %v2997_v59 = vsel %vm354_vm6, %v1658_v37, %v1660_v38  ;;  %v3000_v22 = vsel %vm402_vm7, %v1705_v19, %v1707_v24  ;;  %v1147_v50 = vadd.f32 %v1145_v40, %v1131_v42  ;;  %v1508_v37 = vsel %vm354_vm6, %v1506_v63, %v1507_v28  ;;  %v1921_v63 = vld [vmem:[%s3207_s1 + $0x8] ss:$0 sm:$0xff] }
 0x37f   : > { %1231 = vrot.lane.b32.xlu0 %v2791_v21, %s1986_s23  ;;  %1233 = vrot.lane.b32.xlu1 %v2834_v2, %s1986_s23 }
 0x381   : > { %1243 = vrot.lane.b32.xlu2 %v2791_v21, %s1985_s22  ;;  %v1914_v21 = vld [vmem:[%s3207_s1 + $0x2] ss:$0 sm:$0xff] }
 0x387   : > { %1245 = vrot.lane.b32.xlu0 %v2834_v2, %s1985_s22  ;;  %1360 = vrot.lane.b32.xlu1 %v2849_v1, %s1985_s22 }
 0x389   : > { %1348 = vrot.lane.b32.xlu2 %v2849_v1, %s1986_s23 }
 0x38b   : > { %v1139_v54 = vpop.permute.xlu1 %1138  ;;  %v1151_v2 = vpop.permute.xlu0 %1150 }
 0x38c   : > { %v1144_v20 = vmul.f32 %v1910_v34, %v1139_v54  ;;  %v1156_v1 = vmul.f32 %v1914_v21, %v1151_v2 }
 0x38e   : > { %v1146_v44 = vadd.f32 %v1144_v20, %v1130_v8 }
 0x38f   : > { %1350 = vrot.lane.b32.xlu0 %v2868_v56, %s1986_s23  ;;  %1396 = vrot.lane.b32.xlu1 %v2871_v25, %s1986_s23 }
 0x390   : > { %v1158_v36 = vadd.f32 %v1156_v1, %v1146_v44 }
 0x391   : > { %1362 = vrot.lane.b32.xlu2 %v2868_v56, %s1985_s22 }
 0x392   : > { %v1175_v7 = vadd.f32 %v2794_v15, %v1158_v36  ;;  %v1670_v15 = vrot.slane %v2943_v51, 1  ;;  %v1925_v36 = vld [vmem:[%s3207_s1 + $0x7] ss:$0 sm:$0xff] }
 0x393   : > { %v1153_v29 = vpop.permute.xlu1 %1152 }
 0x394   : > { %v1157_v39 = vmul.f32 %v1914_v21, %v1153_v29 }
 0x396   : > { %v1159_v45 = vadd.f32 %v1157_v39, %v1147_v50 }
 0x397   : > { %1394 = vrot.lane.b32.xlu0 %v2852_v18, %s1986_s23  ;;  %1523 = vrot.lane.b32.xlu1 %v1508_v37, %s1985_s22 }
 0x398   : > { %v1176_v56 = vadd.f32 %v2841_v11, %v1159_v45  ;;  %v1671_v11 = vsel %vm354_vm6, %v1669_v46, %v1670_v15 }
 0x399   : > { %1406 = vrot.lane.b32.xlu2 %v2852_v18, %s1985_s22  ;;  %v1718_v18 = vrot.slane %v2986_v53, 2 }
 0x39b   : > { %v1719_v28 = vsel %vm402_vm7, %v1716_v55, %v1718_v18 }
 0x39f   : > { %1408 = vrot.lane.b32.xlu0 %v2871_v25, %s1985_s22  ;;  %1559 = vrot.lane.b32.xlu1 %v2926_v49, %s1986_s23  ;;  %v3062_v25 = vpop.permute.xlu2 %1303 }
 0x3a1   : > { %1511 = vrot.lane.b32.xlu2 %v1508_v37, %s1986_s23 }
 0x3a3   : > { %v1314_v61 = vpop.permute.xlu0 %1313 }
 0x3a7   : > { %1513 = vrot.lane.b32.xlu0 %v2931_v6, %s1986_s23  ;;  %1641 = vrot.lane.b32.xlu1 %v2943_v51, %s1985_s22 }
 0x3a9   : > { %1525 = vrot.lane.b32.xlu2 %v2931_v6, %s1985_s22  ;;  %v1672_v6 = vrot.slane %v2986_v53, 1 }
 0x3ab   : > { %v3072_v30 = vpop.permute.xlu2 %1466  ;;  %v1673_v9 = vsel %vm354_vm6, %v1670_v15, %v1672_v6  ;;  %v1915_v15 = vld [vmem:[%s3207_s1 + $0xb] ss:$0 sm:$0xff] }
 0x3af   : > { %1557 = vrot.lane.b32.xlu0 %v2910_v41, %s1986_s23  ;;  %1686 = vrot.lane.b32.xlu1 %v1671_v11, %s1985_s22 }
 0x3b1   : > { %1569 = vrot.lane.b32.xlu2 %v2910_v41, %s1985_s22  ;;  %v1302_v41 = vpop.permute.xlu1 %1301 }
 0x3b7   : > { %1571 = vrot.lane.b32.xlu0 %v2926_v49, %s1985_s22  ;;  %1722 = vrot.lane.b32.xlu1 %v1719_v28, %s1986_s23 }
 0x3b9   : > { %1674 = vrot.lane.b32.xlu2 %v1671_v11, %s1986_s23  ;;  %v1316_v55 = vpop.permute.xlu1 %1315 }
 0x3bf   : > { %1676 = vrot.lane.b32.xlu0 %v1673_v9, %s1986_s23 }
 0x3c1   : > { %1688 = vrot.lane.b32.xlu2 %v1673_v9, %s1985_s22 }
 0x3c3   : > { %v3077_v19 = vpop.permute.xlu2 %1629 }
 0x3c7   : > { %1720 = vrot.lane.b32.xlu0 %v2974_v43, %s1986_s23 }
 0x3c9   : > { %1732 = vrot.lane.b32.xlu2 %v2974_v43, %s1985_s22  ;;  %v3083_v13 = vpop.permute.xlu1 %1464  ;;  %v3086_v35 = vpop.permute.xlu0 %1476  ;;  %v1919_v43 = vld [vmem:[%s3207_s1 + $0x4] ss:$0 sm:$0xff] }
 0x3cb   : > { %v1186_v49 = vpop.permute.xlu2 %1185 }
 0x3cc   : > { %v1191_v24 = vmul.f32 %v1919_v43, %v1186_v49  ;;  %v1319_v49 = vmul.f32 %v1915_v15, %v1314_v61 }
 0x3ce   : > { %v1193_v2 = vadd.f32 %v1191_v24, %v1175_v7 }
 0x3cf   : > { %1734 = vrot.lane.b32.xlu0 %v1719_v28, %s1985_s22 }
 0x3d1   : > { %v3088_v53 = vpop.permute.xlu1 %1478 }
 0x3d3   : > { %v1200_v16 = vpop.permute.xlu2 %1199 }
 0x3d4   : > { %v1204_v32 = vmul.f32 %v1920_v17, %v1200_v16  ;;  %v1923_v16 = vld [vmem:[%s3207_s1 + $0xd] ss:$0 sm:$0xff] }
 0x3db   : > { %v1244_v31 = vpop.permute.xlu2 %1243 }
 0x3dc   : > { %v1249_v37 = vmul.f32 %v1921_v63, %v1244_v31 }
 0x3e1   : > { %v3090_v26 = vpop.permute.xlu0 %1639  ;;  %v3092_v38 = vpop.permute.xlu1 %1627 }
 0x3e3   : > { %v1349_v34 = vpop.permute.xlu2 %1348 }
 0x3e9   : > { %v1188_v21 = vpop.permute.xlu0 %1187  ;;  %v1198_v54 = vpop.permute.xlu1 %1197 }
 0x3ea   : > { %v1192_v8 = vmul.f32 %v1919_v43, %v1188_v21  ;;  %v1203_v20 = vmul.f32 %v1920_v17, %v1198_v54 }
 0x3eb   : > { %v1363_v45 = vpop.permute.xlu2 %1362 }
 0x3ec   : > { %v1194_v44 = vadd.f32 %v1192_v8, %v1176_v56  ;;  %v1205_v1 = vadd.f32 %v1203_v20, %v1193_v2  ;;  %v1926_v56 = vld [vmem:[%s3207_s1 + $0x9] ss:$0 sm:$0xff]  ;;  %v1354_v20 = vmul.f32 %v1923_v16, %v1349_v34 }
 0x3ed   : > { %v1294_v21 = vmul.f32 %v1926_v56, %v2812_v14 }
 0x3ee   : > { %v1206_v40 = vadd.f32 %v1204_v32, %v1194_v44  ;;  %v1222_v42 = vadd.f32 %v2797_v60, %v1205_v1  ;;  %v1913_v60 = vld [vmem:[%s3207_s1 + $0xa] ss:$0 sm:$0xff]  ;;  %v1320_v44 = vmul.f32 %v1915_v15, %v1316_v55 }
 0x3ef   : > { %v1307_v28 = vmul.f32 %v1913_v60, %v1302_v41  ;;  %v1924_v41 = vld [vmem:[%s3207_s1 + $0xe] ss:$0 sm:$0xff] }
 0x3f0   : > { %v1223_v29 = vadd.f32 %v2844_v3, %v1206_v40  ;;  %v1293_v3 = vmul.f32 %v1926_v56, %v2823_v58  ;;  %v1308_v58 = vmul.f32 %v1913_v60, %v3062_v25  ;;  %v1929_v56 = vld [vmem:[%s3207_s1 + $0x10] ss:$0 sm:$0xff] }
 0x3f1   : > { %v1232_v50 = vpop.permute.xlu0 %1231  ;;  %v1234_v7 = vpop.permute.xlu1 %1233 }
 0x3f2   : > { %v1237_v39 = vmul.f32 %v1925_v36, %v1232_v50  ;;  %v1238_v18 = vmul.f32 %v1925_v36, %v1234_v7  ;;  %v1367_v7 = vmul.f32 %v1924_v41, %v1363_v45 }
 0x3f3   : > { %v1407_v8 = vpop.permute.xlu2 %1406 }
 0x3f4   : > { %v1239_v46 = vadd.f32 %v1237_v39, %v1222_v42  ;;  %v1240_v43 = vadd.f32 %v1238_v18, %v1223_v29 }
 0x3f6   : > { %v1251_v11 = vadd.f32 %v1249_v37, %v1239_v46 }
 0x3f8   : > { %v1295_v6 = vadd.f32 %v1293_v3, %v1251_v11  ;;  %v1916_v3 = vld [vmem:[%s3207_s1 + $0x13] ss:$0 sm:$0xff]  ;;  %v1918_v11 = vld [vmem:[%s3207_s1 + $0x14] ss:$0 sm:$0xff] }
 0x3f9   : > { %v1246_v9 = vpop.permute.xlu0 %1245  ;;  %v1361_v17 = vpop.permute.xlu1 %1360 }
 0x3fa   : > { %v1309_v31 = vadd.f32 %v1307_v28, %v1295_v6  ;;  %v1250_v24 = vmul.f32 %v1921_v63, %v1246_v9  ;;  %v1366_v36 = vmul.f32 %v1924_v41, %v1361_v17 }
 0x3fb   : > { %v1512_v37 = vpop.permute.xlu2 %1511 }
 0x3fc   : > { %v1252_v54 = vadd.f32 %v1250_v24, %v1240_v43  ;;  %v1321_v2 = vadd.f32 %v1319_v49, %v1309_v31  ;;  %v1482_v43 = vmul.f32 %v1918_v11, %v3086_v35  ;;  %v1928_v24 = vld [vmem:[%s3207_s1 + $0x16] ss:$0 sm:$0xff] }
 0x3fe   : > { %v1296_v61 = vadd.f32 %v1294_v21, %v1252_v54  ;;  %v1338_v32 = vadd.f32 %v2856_v5, %v1321_v2  ;;  %v1927_v5 = vld [vmem:[%s3207_s1 + $0x11] ss:$0 sm:$0xff] }
 0x3ff   : > { %v1412_v15 = vmul.f32 %v1927_v5, %v1407_v8 }
 0x400   : > { %v1310_v1 = vadd.f32 %v1308_v58, %v1296_v61  ;;  %v1356_v40 = vadd.f32 %v1354_v20, %v1338_v32  ;;  %v1471_v58 = vmul.f32 %v1916_v3, %v3072_v30  ;;  %v1930_v20 = vld [vmem:[%s3207_s1 + $0x17] ss:$0 sm:$0xff]  ;;  %v1483_v61 = vmul.f32 %v1918_v11, %v3088_v53  ;;  %v1933_v53 = vld [vmem:[%s3207_s1 + $0x19] ss:$0 sm:$0xff] }
 0x401   : > { %v1351_v42 = vpop.permute.xlu0 %1350  ;;  %v1397_v34 = vpop.permute.xlu1 %1396 }
 0x402   : > { %v1368_v63 = vadd.f32 %v1366_v36, %v1356_v40  ;;  %v1322_v14 = vadd.f32 %v1320_v44, %v1310_v1  ;;  %v1355_v50 = vmul.f32 %v1923_v16, %v1351_v42  ;;  %v1401_v9 = vmul.f32 %v1929_v56, %v1397_v34 }
 0x403   : > { %v1526_v16 = vpop.permute.xlu2 %1525 }
 0x404   : > { %v1339_v29 = vadd.f32 %v2874_v23, %v1322_v14  ;;  %v1385_v25 = vadd.f32 %v2859_v52, %v1368_v63  ;;  %v1931_v52 = vld [vmem:[%s3207_s1 + $0x12] ss:$0 sm:$0xff] }
 0x405   : > { %v1456_v18 = vmul.f32 %v1931_v52, %v2898_v33  ;;  %v1457_v33 = vmul.f32 %v1931_v52, %v2883_v0 }
 0x406   : > { %v1357_v39 = vadd.f32 %v1355_v50, %v1339_v29  ;;  %v1530_v50 = vmul.f32 %v1930_v20, %v1526_v16 }
 0x408   : > { %v1369_v55 = vadd.f32 %v1367_v7, %v1357_v39 }
 0x409   : > { %v1395_v46 = vpop.permute.xlu0 %1394  ;;  %v1524_v6 = vpop.permute.xlu1 %1523 }
 0x40a   : > { %v1386_v60 = vadd.f32 %v2877_v62, %v1369_v55  ;;  %v1400_v23 = vmul.f32 %v1929_v56, %v1395_v46  ;;  %v1470_v62 = vmul.f32 %v1916_v3, %v3083_v13  ;;  %v1517_v13 = vmul.f32 %v1928_v24, %v1512_v37  ;;  %v1917_v46 = vld [vmem:[%s3207_s1 + $0x1c] ss:$0 sm:$0xff] }
 0x40b   : > { %v1529_v44 = vmul.f32 %v1930_v20, %v1524_v6  ;;  %v1570_v63 = vpop.permute.xlu2 %1569 }
 0x40c   : > { %v1402_v45 = vadd.f32 %v1400_v23, %v1385_v25  ;;  %v1403_v17 = vadd.f32 %v1401_v9, %v1386_v60  ;;  %v1922_v60 = vld [vmem:[%s3207_s1 + $0x1d] ss:$0 sm:$0xff] }
 0x40d   : > { %v1645_v11 = vmul.f32 %v1922_v60, %v3090_v26 }
 0x40e   : > { %v1414_v28 = vadd.f32 %v1412_v15, %v1402_v45 }
 0x410   : > { %v1458_v49 = vadd.f32 %v1456_v18, %v1414_v28  ;;  %v1934_v18 = vld [vmem:[%s3207_s1 + $0x1f] ss:$0 sm:$0xff] }
 0x411   : > { %v1409_v31 = vpop.permute.xlu0 %1408  ;;  %v1560_v40 = vpop.permute.xlu1 %1559 }
 0x412   : > { %v1472_v21 = vadd.f32 %v1470_v62, %v1458_v49  ;;  %v1413_v54 = vmul.f32 %v1927_v5, %v1409_v31  ;;  %v1564_v52 = vmul.f32 %v1933_v53, %v1560_v40 }
 0x413   : > { %v1675_v56 = vpop.permute.xlu2 %1674 }
 0x414   : > { %v1484_v2 = vadd.f32 %v1482_v43, %v1472_v21  ;;  %v1415_v8 = vadd.f32 %v1413_v54, %v1403_v17  ;;  %v1935_v43 = vld [vmem:[%s3207_s1 + $0x20] ss:$0 sm:$0xff] }
 0x416   : > { %v1501_v35 = vadd.f32 %v2913_v57, %v1484_v2  ;;  %v1459_v41 = vadd.f32 %v1457_v33, %v1415_v8  ;;  %v1932_v57 = vld [vmem:[%s3207_s1 + $0x1a] ss:$0 sm:$0xff] }
 0x418   : > { %v1519_v32 = vadd.f32 %v1517_v13, %v1501_v35  ;;  %v1473_v1 = vadd.f32 %v1471_v58, %v1459_v41 }
 0x419   : > { %v1514_v36 = vpop.permute.xlu0 %1513  ;;  %v1642_v5 = vpop.permute.xlu1 %1641 }
 0x41a   : > { %v1531_v42 = vadd.f32 %v1529_v44, %v1519_v32  ;;  %v1485_v0 = vadd.f32 %v1483_v61, %v1473_v1  ;;  %v1518_v14 = vmul.f32 %v1928_v24, %v1514_v36  ;;  %v1646_v21 = vmul.f32 %v1922_v60, %v1642_v5  ;;  %v1938_v61 = vld [vmem:[%s3207_s1 + $0x22] ss:$0 sm:$0xff] }
 0x41b   : > { %v1689_v17 = vpop.permute.xlu2 %1688 }
 0x41c   : > { %v1502_v30 = vadd.f32 %v2934_v10, %v1485_v0  ;;  %v1548_v29 = vadd.f32 %v2916_v12, %v1531_v42  ;;  %v1575_v10 = vmul.f32 %v1932_v57, %v1570_v63  ;;  %v1936_v12 = vld [vmem:[%s3207_s1 + $0x1b] ss:$0 sm:$0xff]  ;;  %v1693_v35 = vmul.f32 %v1935_v43, %v1689_v17 }
 0x41d   : > { %v1619_v15 = vmul.f32 %v1936_v12, %v2958_v48  ;;  %v1620_v16 = vmul.f32 %v1936_v12, %v2943_v51  ;;  %v1634_v48 = vmul.f32 %v1917_v46, %v3077_v19 }
 0x41e   : > { %v1520_v25 = vadd.f32 %v1518_v14, %v1502_v30 }
 0x420   : > { %v1532_v34 = vadd.f32 %v1530_v50, %v1520_v25 }
 0x421   : > { %v1558_v7 = vpop.permute.xlu0 %1557  ;;  %v1687_v31 = vpop.permute.xlu1 %1686 }
 0x422   : > { %v1563_v39 = vmul.f32 %v1933_v53, %v1558_v7  ;;  %v1549_v37 = vadd.f32 %v2937_v4, %v1532_v34  ;;  %v1633_v4 = vmul.f32 %v1917_v46, %v3092_v38  ;;  %v1680_v38 = vmul.f32 %v1934_v18, %v1675_v56 }
 0x423   : > { %v1692_v2 = vmul.f32 %v1935_v43, %v1687_v31  ;;  %v1733_v44 = vpop.permute.xlu2 %1732 }
 0x424   : > { %v1565_v55 = vadd.f32 %v1563_v39, %v1548_v29  ;;  %v1566_v6 = vadd.f32 %v1564_v52, %v1549_v37 }
 0x426   : > { %v1577_v23 = vadd.f32 %v1575_v10, %v1565_v55 }
 0x428   : > { %v1621_v45 = vadd.f32 %v1619_v15, %v1577_v23 }
 0x429   : > { %v1572_v3 = vpop.permute.xlu0 %1571  ;;  %v1723_v0 = vpop.permute.xlu1 %1722 }
 0x42a   : > { %v1635_v28 = vadd.f32 %v1633_v4, %v1621_v45  ;;  %v1576_v62 = vmul.f32 %v1932_v57, %v1572_v3  ;;  %v1727_v63 = vmul.f32 %v1938_v61, %v1723_v0 }
 0x42c   : > { %v1647_v9 = vadd.f32 %v1645_v11, %v1635_v28  ;;  %v1578_v49 = vadd.f32 %v1576_v62, %v1566_v6 }
 0x42e   : > { %v1664_v26 = vadd.f32 %v2977_v27, %v1647_v9  ;;  %v1622_v24 = vadd.f32 %v1620_v16, %v1578_v49  ;;  %v1937_v27 = vld [vmem:[%s3207_s1 + $0x23] ss:$0 sm:$0xff] }
 0x430   : > { %v1682_v54 = vadd.f32 %v1680_v38, %v1664_v26  ;;  %v1636_v33 = vadd.f32 %v1634_v48, %v1622_v24 }
 0x431   : > { %v1677_v8 = vpop.permute.xlu0 %1676 }
 0x432   : > { %v1694_v58 = vadd.f32 %v1692_v2, %v1682_v54  ;;  %v1648_v13 = vadd.f32 %v1646_v21, %v1636_v33  ;;  %v1681_v20 = vmul.f32 %v1934_v18, %v1677_v8 }
 0x434   : > { %v1665_v51 = vadd.f32 %v2997_v59, %v1648_v13  ;;  %v1711_v19 = vadd.f32 %v2980_v47, %v1694_v58  ;;  %v1738_v59 = vmul.f32 %v1937_v27, %v1733_v44 }
 0x436   : > { %v1683_v41 = vadd.f32 %v1681_v20, %v1665_v51 }
 0x438   : > { %v1695_v32 = vadd.f32 %v1693_v35, %v1683_v41 }
 0x439   : > { %v1721_v1 = vpop.permute.xlu0 %1720 }
 0x43a   : > { %v1726_v40 = vmul.f32 %v1938_v61, %v1721_v1  ;;  %v1712_v36 = vadd.f32 %v3000_v22, %v1695_v32 }
 0x43c   : > { %v1728_v42 = vadd.f32 %v1726_v40, %v1711_v19  ;;  %v1729_v14 = vadd.f32 %v1727_v63, %v1712_v36 }
 0x43e   : > { %v1740_v47 = vadd.f32 %v1738_v59, %v1728_v42 }
 0x440   : > { %1750 = vrot.lane.b32.xlu0 %v1740_v47, %s1990_s18  ;;  %1744 = vrot.lane.b32.xlu1 %v1740_v47, %s1985_s22 }
 0x441   : > { %v1735_v30 = vpop.permute.xlu0 %1734 }
 0x442   : > { %v1739_v29 = vmul.f32 %v1937_v27, %v1735_v30 }
 0x444   : > { %v1741_v50 = vadd.f32 %v1739_v29, %v1729_v14 }
 0x446   : > { %1746 = vrot.lane.b32.xlu2 %v1741_v50, %s1985_s22 }
 0x448   : > { %1758 = vrot.lane.b32.xlu0 %v1741_v50, %s1991_s26  ;;  %1752 = vrot.lane.b32.xlu1 %v1741_v50, %s1990_s18 }
 0x44e   : > { %1756 = vrot.lane.b32.xlu2 %v1740_v47, %s1991_s26 }
 0x4a0   : > { %v1747_v22 = vpop.permute.xlu2 %1746 }
 0x4a1   : > { %v1764_v37 = vsel %vm1762_vm9, %v1741_v50, %v1747_v22 }
 0x4a8   : > { %v1757_v34 = vpop.permute.xlu2 %1756 }
 0x4b2   : > { %v1751_v25 = vpop.permute.xlu0 %1750  ;;  %v1745_v57 = vpop.permute.xlu1 %1744 }
 0x4b3   : > { %v1763_v53 = vsel %vm1762_vm9, %v1740_v47, %v1745_v57 }
 0x4b4   : > { %v1766_v7 = vsel %vm1765_vm8, %v1763_v53, %v1751_v25 }
 0x4b5   : > { %v1769_v39 = vsel %vm1768_vm10, %v1766_v7, %v1757_v34 }
 0x4b6   : > { %1772 = vst.msk [vmem:[%s170_s20] sm:$0xff] %vm1771_vm11, %v1769_v39 }
 0x4ba   : > { %v1759_v5 = vpop.permute.xlu0 %1758  ;;  %v1753_v10 = vpop.permute.xlu1 %1752 }
 0x4bb   : > { %v1767_v12 = vsel %vm1765_vm8, %v1764_v37, %v1753_v10 }
 0x4bc   : > { %v1770_v55 = vsel %vm1768_vm10, %v1767_v12, %v1759_v5 }
 0x4bd   : > { %1773 = vst.msk [vmem:[%s170_s20 + $0x8] sm:$0xff] %vm1771_vm11, %v1770_v55 }
 0x4be PF: > { %s13_s12 = sadd.s32 1, %s1979_s12  }
 0x4bf   : > { %p10_p4 = scmp.ge.s32.totalorder %s13_s12, 4  }
 0x4c1   :  { %12 = sbr.rel (!%p10_p4) target bundleno = 1 (0x1), region = 65 }

</bundles_post_ra>
